<compile_context>
chip_gen: v5e
topology: v5e:2x2
jax: 0.10.0
libtpu: 0.0.40
codegen_flags: <defaults>
</compile_context>

<pallas_src>
import functools

import jax
import jax.numpy as jnp
from jax import lax
from jax.experimental import pallas as pl
from jax.experimental.pallas import tpu as pltpu


LANE = 128  # output-channel tile (lane-dense stores, full MXU N dimension)


# ---------------------------------------------------------------------------
# Pallas kernel: fused shifted-window conv (16 MXU matmuls) + InstanceNorm + LeakyReLU
# One grid step = (one image) x (one 128-wide output-channel tile).
# ---------------------------------------------------------------------------
def _conv_in_lrelu_kernel(xp_ref, w_ref, o_ref, acc_ref, *, k, stride, hpp,
                          ho, wo, eps, neg_slope):
    # xp_ref : (1, s*s*Hpp, Wpp, C_in)   stride-phase-split padded image (compute dtype)
    # w_ref  : (K*K, C_in, TCO)          per-tap weight tile (compute dtype)
    # o_ref  : (1, P, TCO)               P = Ho*Wo
    # acc_ref: (P, TCO) f32 VMEM scratch
    p = ho * wo
    c_in = xp_ref.shape[-1]

    acc_ref[...] = jnp.zeros_like(acc_ref)

    # Convolution = sum over the K*K taps of a (P, C_in) @ (C_in, TCO) MXU matmul.
    # All slices below are static and unit-stride (striding was folded into the phase split).
    for kh in range(k):
        a, ph = kh % stride, kh // stride
        for kw in range(k):
            b, pw = kw % stride, kw // stride
            row0 = (a * stride + b) * hpp + ph
            win = xp_ref[0, row0:row0 + ho, pw:pw + wo, :]          # (Ho, Wo, C_in)
            acc_ref[...] += jnp.dot(win.reshape(p, c_in),
                                    w_ref[kh * k + kw],
                                    preferred_element_type=jnp.float32)

    # InstanceNorm2d (no affine, biased variance) fused with LeakyReLU, single pass.
    conv = acc_ref[...]                                             # (P, TCO) f32
    mean = jnp.mean(conv, axis=0, keepdims=True)                    # (1, TCO)
    mean_sq = jnp.mean(conv * conv, axis=0, keepdims=True)
    var = jnp.maximum(mean_sq - mean * mean, 0.0)
    inv = lax.rsqrt(var + eps)
    normed = (conv - mean) * inv
    out = jnp.where(normed >= 0, normed, neg_slope * normed)
    o_ref[0] = out.astype(o_ref.dtype)


# ---------------------------------------------------------------------------
# Wrapper glue
# ---------------------------------------------------------------------------
def _phase_split(x_pad, stride):
    """(N, Hp, Wp, C) NHWC -> (N, s*s*Hpp, Wpp, C).

    Phase (a, b) holds x_pad[:, a::s, b::s, :] (zero-padded to a common (Hpp, Wpp)); this turns
    every strided conv window into a unit-stride slice inside the kernel.  Total bytes are
    ~unchanged (no K*K im2col inflation)."""
    n, hp, wp, c = x_pad.shape
    s = stride
    hpp, wpp = -(-hp // s), -(-wp // s)
    phases = []
    for a in range(s):
        for b in range(s):
            ph = x_pad[:, a::s, b::s, :]
            ph = jnp.pad(ph, ((0, 0), (0, hpp - ph.shape[1]),
                              (0, wpp - ph.shape[2]), (0, 0)))
            phases.append(ph)
    x_ph = jnp.stack(phases, axis=1)                 # (N, s*s, Hpp, Wpp, C)
    return x_ph.reshape(n, s * s * hpp, wpp, c), hpp, wpp


def conv_instancenorm_leakyrelu(x, weight, bias=None, *, stride, eps=1e-5,
                                neg_slope=0.2, compute_dtype=jnp.bfloat16):
    """x: (N, C_in, H, W) NCHW.  weight: (C_out, C_in, 4, 4).  bias: (C_out,) (accepted for API
    parity but unused: InstanceNorm without affine exactly cancels a per-channel bias).
    Returns (N, C_out, H_out, W_out) NCHW."""
    del bias  # mathematically a no-op under InstanceNorm (no affine)

    n, c_in, h, w = x.shape
    c_out, c_in_w, k, k2 = weight.shape
    assert c_in_w == c_in and k == k2

    # NCHW -> NHWC, reflect pad by 1 (matches padding_mode='reflect', padding=1).
    x_nhwc = jnp.transpose(x, (0, 2, 3, 1))
    x_pad = jnp.pad(x_nhwc, ((0, 0), (1, 1), (1, 1), (0, 0)), mode="reflect")
    hp, wp = h + 2, w + 2
    ho = (hp - k) // stride + 1
    wo = (wp - k) // stride + 1
    p = ho * wo

    x_ph, hpp, wpp = _phase_split(x_pad.astype(compute_dtype), stride)

    # Lane-dense output-channel tiling: pad C_out up to a multiple of 128.  Padded channels have
    # zero weights -> zero conv -> zero output after InstanceNorm/LeakyReLU; sliced off below.
    c_pad = max(LANE, -(-c_out // LANE) * LANE)
    n_co = c_pad // LANE
    w_taps = jnp.transpose(weight, (2, 3, 1, 0)).reshape(k * k, c_in, c_out)
    w_taps = jnp.pad(w_taps, ((0, 0), (0, 0), (0, c_pad - c_out))).astype(compute_dtype)

    kernel = functools.partial(_conv_in_lrelu_kernel, k=k, stride=stride, hpp=hpp,
                               ho=ho, wo=wo, eps=eps, neg_slope=neg_slope)

    out_flat = pl.pallas_call(
        kernel,
        out_shape=jax.ShapeDtypeStruct((n, p, c_pad), x.dtype),
        grid_spec=pltpu.PrefetchScalarGridSpec(
            num_scalar_prefetch=0,
            grid=(n, n_co),
            in_specs=[
                pl.BlockSpec((1, stride * stride * hpp, wpp, c_in),
                             lambda b, co: (b, 0, 0, 0)),
                pl.BlockSpec((k * k, c_in, LANE), lambda b, co: (0, 0, co)),
            ],
            out_specs=pl.BlockSpec((1, p, LANE), lambda b, co: (b, 0, co)),
            scratch_shapes=[pltpu.VMEM((p, LANE), jnp.float32)],
        ),
        # Both grid axes are independent -> megacore sharding on v7x even for N=1.
        # (For production-size feature maps, also set vmem_limit_bytes per chip generation.)
        compiler_params=pltpu.CompilerParams(
            dimension_semantics=("parallel", "parallel")),
    )(x_ph, w_taps)

    # (N, P, C_pad) -> slice real channels -> (N, Ho, Wo, C_out) -> NCHW (PyTorch parity).
    out = out_flat[:, :, :c_out].reshape(n, ho, wo, c_out).transpose(0, 3, 1, 2)
    return out


# ---------------------------------------------------------------------------
# Pure-JAX reference (full PyTorch math path, f32, including the bias).
# ---------------------------------------------------------------------------
def _reference(x, weight, bias, *, stride, eps=1e-5, neg_slope=0.2):
    xpad = jnp.pad(x, ((0, 0), (0, 0), (1, 1), (1, 1)), mode="reflect")
    conv = lax.conv_general_dilated(
        xpad.astype(jnp.float32), weight.astype(jnp.float32),
        window_strides=(stride, stride), padding="VALID",
        dimension_numbers=("NCHW", "OIHW", "NCHW"))
    conv = conv + bias.reshape(1, -1, 1, 1)
    mean = jnp.mean(conv, axis=(2, 3), keepdims=True)
    var = jnp.mean((conv - mean) ** 2, axis=(2, 3), keepdims=True)
    normed = (conv - mean) * lax.rsqrt(var + eps)
    return jnp.where(normed >= 0, normed, neg_slope * normed)


if __name__ == "__main__":
    key = jax.random.PRNGKey(0)
    k1, k2 = jax.random.split(key)

    # (key, N, C_in, H, W, C_out, stride): stride-2 (typical block) and stride-1 (last block).
    configs = [
        (k1, 2, 4, 16, 16, 8, 2),
        (k2, 1, 3, 17, 17, 6, 1),
    ]

    for (kk, N, C_IN, H, W, C_OUT, STRIDE) in configs:
        kx, kw_, kb = jax.random.split(kk, 3)
        x = jax.random.normal(kx, (N, C_IN, H, W), dtype=jnp.float32)
        fan_in = C_IN * 4 * 4
        weight = jax.random.normal(kw_, (C_OUT, C_IN, 4, 4),
                                   dtype=jnp.float32) / jnp.sqrt(fan_in)
        bias = jax.random.normal(kb, (C_OUT,), dtype=jnp.float32) * 0.1

        ref = _reference(x, weight, bias, stride=STRIDE)

        # Exact-semantics check with f32 MXU operands (tight tolerance).
        out_f32 = conv_instancenorm_leakyrelu(x, weight, bias, stride=STRIDE,
                                              compute_dtype=jnp.float32)
        out_f32 = jax.block_until_ready(out_f32)
        assert out_f32.shape == ref.shape, (out_f32.shape, ref.shape)
        err_f32 = float(jnp.max(jnp.abs(out_f32 - ref)))
        assert err_f32 < 3e-3, err_f32

        # Default fast path: bf16 MXU operands, f32 accumulation / normalization.
        out_bf16 = conv_instancenorm_leakyrelu(x, weight, bias, stride=STRIDE)
        out_bf16 = jax.block_until_ready(out_bf16)
        assert out_bf16.shape == ref.shape, (out_bf16.shape, ref.shape)
        err_bf16 = float(jnp.max(jnp.abs(out_bf16 - ref)))
        assert err_bf16 < 5e-2, err_bf16

    print("KERNEL_OK")
</pallas_src>

<mosaic_0001>
module attributes {stable_mosaic.version = 11 : i64} {
  func.func @_conv_in_lrelu_kernel(%arg0: i32, %arg1: i32, %arg2: memref<1x36x9x4xf32, #tpu.memory_space<vmem>>, %arg3: memref<16x4x128xf32, #tpu.memory_space<vmem>>, %arg4: memref<1x64x128xf32, #tpu.memory_space<vmem>>, %arg5: memref<64x128xf32, #tpu.memory_space<vmem>>) attributes {dimension_semantics = [#tpu.dimension_semantics<parallel>, #tpu.dimension_semantics<parallel>], iteration_bounds = array<i64: 2, 1>, scalar_prefetch = 0 : i64, scratch_operands = 1 : i64, tpu.core_type = #tpu.core_type<tc>, window_params = [{transform_indices = @transform_0, window_bounds = array<i64: 1, 36, 9, 4>}, {transform_indices = @transform_1, window_bounds = array<i64: 16, 4, 128>}, {transform_indices = @transform_2, window_bounds = array<i64: 1, 64, 128>}]} {
    %cst = arith.constant 0.000000e+00 : f32
    %0 = vector.broadcast %cst : f32 to vector<64x128xf32>
    %c0 = arith.constant 0 : index
    %c0_0 = arith.constant 0 : index
    %1 = vector.load %arg5[%c0, %c0_0] : memref<64x128xf32, #tpu.memory_space<vmem>>, vector<64x128xf32>
    tpu.vector_store %arg5[%c0, %c0_0], %0 {strides = array<i32>} : memref<64x128xf32, #tpu.memory_space<vmem>>, vector<64x128xf32>,
    %c0_1 = arith.constant 0 : index
    %c0_2 = arith.constant 0 : index
    %c0_3 = arith.constant 0 : index
    %c0_4 = arith.constant 0 : index
    %2 = vector.load %arg2[%c0_1, %c0_2, %c0_3, %c0_4] : memref<1x36x9x4xf32, #tpu.memory_space<vmem>>, vector<1x8x8x4xf32>
    %3 = vector.shape_cast %2 : vector<1x8x8x4xf32> to vector<8x8x4xf32>
    %c0_5 = arith.constant 0 : index
    %c0_6 = arith.constant 0 : index
    %4 = vector.load %arg5[%c0_5, %c0_6] : memref<64x128xf32, #tpu.memory_space<vmem>>, vector<64x128xf32>
    %5 = vector.shape_cast %3 : vector<8x8x4xf32> to vector<64x4xf32>
    %c0_7 = arith.constant 0 : index
    %c0_8 = arith.constant 0 : index
    %c0_9 = arith.constant 0 : index
    %6 = vector.load %arg3[%c0_7, %c0_8, %c0_9] : memref<16x4x128xf32, #tpu.memory_space<vmem>>, vector<1x4x128xf32>
    %7 = vector.shape_cast %6 : vector<1x4x128xf32> to vector<4x128xf32>
    %cst_10 = arith.constant dense<0.000000e+00> : vector<64x128xf32>
    %8 = tpu.matmul %5, %7, %cst_10 {dimension_numbers = #tpu.dot_dimension_numbers<[1], [0], [0], [1], [0, 0, 1, 1], [], []>} : vector<64x4xf32>, vector<4x128xf32>, vector<64x128xf32> -> vector<64x128xf32>
    %9 = arith.addf %4, %8 : vector<64x128xf32>
    %c0_11 = arith.constant 0 : index
    %c0_12 = arith.constant 0 : index
    %10 = vector.load %arg5[%c0_11, %c0_12] : memref<64x128xf32, #tpu.memory_space<vmem>>, vector<64x128xf32>
    tpu.vector_store %arg5[%c0_11, %c0_12], %9 {strides = array<i32>} : memref<64x128xf32, #tpu.memory_space<vmem>>, vector<64x128xf32>,
    %c0_13 = arith.constant 0 : index
    %c9 = arith.constant 9 : index
    %c0_14 = arith.constant 0 : index
    %c0_15 = arith.constant 0 : index
    %11 = vector.load %arg2[%c0_13, %c9, %c0_14, %c0_15] : memref<1x36x9x4xf32, #tpu.memory_space<vmem>>, vector<1x8x8x4xf32>
    %12 = vector.shape_cast %11 : vector<1x8x8x4xf32> to vector<8x8x4xf32>
    %c0_16 = arith.constant 0 : index
    %c0_17 = arith.constant 0 : index
    %13 = vector.load %arg5[%c0_16, %c0_17] : memref<64x128xf32, #tpu.memory_space<vmem>>, vector<64x128xf32>
    %14 = vector.shape_cast %12 : vector<8x8x4xf32> to vector<64x4xf32>
    %c1 = arith.constant 1 : index
    %c0_18 = arith.constant 0 : index
    %c0_19 = arith.constant 0 : index
    %15 = vector.load %arg3[%c1, %c0_18, %c0_19] : memref<16x4x128xf32, #tpu.memory_space<vmem>>, vector<1x4x128xf32>
    %16 = vector.shape_cast %15 : vector<1x4x128xf32> to vector<4x128xf32>
    %cst_20 = arith.constant dense<0.000000e+00> : vector<64x128xf32>
    %17 = tpu.matmul %14, %16, %cst_20 {dimension_numbers = #tpu.dot_dimension_numbers<[1], [0], [0], [1], [0, 0, 1, 1], [], []>} : vector<64x4xf32>, vector<4x128xf32>, vector<64x128xf32> -> vector<64x128xf32>
    %18 = arith.addf %13, %17 : vector<64x128xf32>
    %c0_21 = arith.constant 0 : index
    %c0_22 = arith.constant 0 : index
    %19 = vector.load %arg5[%c0_21, %c0_22] : memref<64x128xf32, #tpu.memory_space<vmem>>, vector<64x128xf32>
    tpu.vector_store %arg5[%c0_21, %c0_22], %18 {strides = array<i32>} : memref<64x128xf32, #tpu.memory_space<vmem>>, vector<64x128xf32>,
    %c0_23 = arith.constant 0 : index
    %c0_24 = arith.constant 0 : index
    %c1_25 = arith.constant 1 : index
    %c0_26 = arith.constant 0 : index
    %20 = vector.load %arg2[%c0_23, %c0_24, %c1_25, %c0_26] : memref<1x36x9x4xf32, #tpu.memory_space<vmem>>, vector<1x8x8x4xf32>
    %21 = vector.shape_cast %20 : vector<1x8x8x4xf32> to vector<8x8x4xf32>
    %c0_27 = arith.constant 0 : index
    %c0_28 = arith.constant 0 : index
    %22 = vector.load %arg5[%c0_27, %c0_28] : memref<64x128xf32, #tpu.memory_space<vmem>>, vector<64x128xf32>
    %23 = vector.shape_cast %21 : vector<8x8x4xf32> to vector<64x4xf32>
    %c2 = arith.constant 2 : index
    %c0_29 = arith.constant 0 : index
    %c0_30 = arith.constant 0 : index
    %24 = vector.load %arg3[%c2, %c0_29, %c0_30] : memref<16x4x128xf32, #tpu.memory_space<vmem>>, vector<1x4x128xf32>
    %25 = vector.shape_cast %24 : vector<1x4x128xf32> to vector<4x128xf32>
    %cst_31 = arith.constant dense<0.000000e+00> : vector<64x128xf32>
    %26 = tpu.matmul %23, %25, %cst_31 {dimension_numbers = #tpu.dot_dimension_numbers<[1], [0], [0], [1], [0, 0, 1, 1], [], []>} : vector<64x4xf32>, vector<4x128xf32>, vector<64x128xf32> -> vector<64x128xf32>
    %27 = arith.addf %22, %26 : vector<64x128xf32>
    %c0_32 = arith.constant 0 : index
    %c0_33 = arith.constant 0 : index
    %28 = vector.load %arg5[%c0_32, %c0_33] : memref<64x128xf32, #tpu.memory_space<vmem>>, vector<64x128xf32>
    tpu.vector_store %arg5[%c0_32, %c0_33], %27 {strides = array<i32>} : memref<64x128xf32, #tpu.memory_space<vmem>>, vector<64x128xf32>,
    %c0_34 = arith.constant 0 : index
    %c9_35 = arith.constant 9 : index
    %c1_36 = arith.constant 1 : index
    %c0_37 = arith.constant 0 : index
    %29 = vector.load %arg2[%c0_34, %c9_35, %c1_36, %c0_37] : memref<1x36x9x4xf32, #tpu.memory_space<vmem>>, vector<1x8x8x4xf32>
    %30 = vector.shape_cast %29 : vector<1x8x8x4xf32> to vector<8x8x4xf32>
    %c0_38 = arith.constant 0 : index
    %c0_39 = arith.constant 0 : index
    %31 = vector.load %arg5[%c0_38, %c0_39] : memref<64x128xf32, #tpu.memory_space<vmem>>, vector<64x128xf32>
    %32 = vector.shape_cast %30 : vector<8x8x4xf32> to vector<64x4xf32>
    %c3 = arith.constant 3 : index
    %c0_40 = arith.constant 0 : index
    %c0_41 = arith.constant 0 : index
    %33 = vector.load %arg3[%c3, %c0_40, %c0_41] : memref<16x4x128xf32, #tpu.memory_space<vmem>>, vector<1x4x128xf32>
    %34 = vector.shape_cast %33 : vector<1x4x128xf32> to vector<4x128xf32>
    %cst_42 = arith.constant dense<0.000000e+00> : vector<64x128xf32>
    %35 = tpu.matmul %32, %34, %cst_42 {dimension_numbers = #tpu.dot_dimension_numbers<[1], [0], [0], [1], [0, 0, 1, 1], [], []>} : vector<64x4xf32>, vector<4x128xf32>, vector<64x128xf32> -> vector<64x128xf32>
    %36 = arith.addf %31, %35 : vector<64x128xf32>
    %c0_43 = arith.constant 0 : index
    %c0_44 = arith.constant 0 : index
    %37 = vector.load %arg5[%c0_43, %c0_44] : memref<64x128xf32, #tpu.memory_space<vmem>>, vector<64x128xf32>
    tpu.vector_store %arg5[%c0_43, %c0_44], %36 {strides = array<i32>} : memref<64x128xf32, #tpu.memory_space<vmem>>, vector<64x128xf32>,
    %c0_45 = arith.constant 0 : index
    %c18 = arith.constant 18 : index
    %c0_46 = arith.constant 0 : index
    %c0_47 = arith.constant 0 : index
    %38 = vector.load %arg2[%c0_45, %c18, %c0_46, %c0_47] : memref<1x36x9x4xf32, #tpu.memory_space<vmem>>, vector<1x8x8x4xf32>
    %39 = vector.shape_cast %38 : vector<1x8x8x4xf32> to vector<8x8x4xf32>
    %c0_48 = arith.constant 0 : index
    %c0_49 = arith.constant 0 : index
    %40 = vector.load %arg5[%c0_48, %c0_49] : memref<64x128xf32, #tpu.memory_space<vmem>>, vector<64x128xf32>
    %41 = vector.shape_cast %39 : vector<8x8x4xf32> to vector<64x4xf32>
    %c4 = arith.constant 4 : index
    %c0_50 = arith.constant 0 : index
    %c0_51 = arith.constant 0 : index
    %42 = vector.load %arg3[%c4, %c0_50, %c0_51] : memref<16x4x128xf32, #tpu.memory_space<vmem>>, vector<1x4x128xf32>
    %43 = vector.shape_cast %42 : vector<1x4x128xf32> to vector<4x128xf32>
    %cst_52 = arith.constant dense<0.000000e+00> : vector<64x128xf32>
    %44 = tpu.matmul %41, %43, %cst_52 {dimension_numbers = #tpu.dot_dimension_numbers<[1], [0], [0], [1], [0, 0, 1, 1], [], []>} : vector<64x4xf32>, vector<4x128xf32>, vector<64x128xf32> -> vector<64x128xf32>
    %45 = arith.addf %40, %44 : vector<64x128xf32>
    %c0_53 = arith.constant 0 : index
    %c0_54 = arith.constant 0 : index
    %46 = vector.load %arg5[%c0_53, %c0_54] : memref<64x128xf32, #tpu.memory_space<vmem>>, vector<64x128xf32>
    tpu.vector_store %arg5[%c0_53, %c0_54], %45 {strides = array<i32>} : memref<64x128xf32, #tpu.memory_space<vmem>>, vector<64x128xf32>,
    %c0_55 = arith.constant 0 : index
    %c27 = arith.constant 27 : index
    %c0_56 = arith.constant 0 : index
    %c0_57 = arith.constant 0 : index
    %47 = vector.load %arg2[%c0_55, %c27, %c0_56, %c0_57] : memref<1x36x9x4xf32, #tpu.memory_space<vmem>>, vector<1x8x8x4xf32>
    %48 = vector.shape_cast %47 : vector<1x8x8x4xf32> to vector<8x8x4xf32>
    %c0_58 = arith.constant 0 : index
    %c0_59 = arith.constant 0 : index
    %49 = vector.load %arg5[%c0_58, %c0_59] : memref<64x128xf32, #tpu.memory_space<vmem>>, vector<64x128xf32>
    %50 = vector.shape_cast %48 : vector<8x8x4xf32> to vector<64x4xf32>
    %c5 = arith.constant 5 : index
    %c0_60 = arith.constant 0 : index
    %c0_61 = arith.constant 0 : index
    %51 = vector.load %arg3[%c5, %c0_60, %c0_61] : memref<16x4x128xf32, #tpu.memory_space<vmem>>, vector<1x4x128xf32>
    %52 = vector.shape_cast %51 : vector<1x4x128xf32> to vector<4x128xf32>
    %cst_62 = arith.constant dense<0.000000e+00> : vector<64x128xf32>
    %53 = tpu.matmul %50, %52, %cst_62 {dimension_numbers = #tpu.dot_dimension_numbers<[1], [0], [0], [1], [0, 0, 1, 1], [], []>} : vector<64x4xf32>, vector<4x128xf32>, vector<64x128xf32> -> vector<64x128xf32>
    %54 = arith.addf %49, %53 : vector<64x128xf32>
    %c0_63 = arith.constant 0 : index
    %c0_64 = arith.constant 0 : index
    %55 = vector.load %arg5[%c0_63, %c0_64] : memref<64x128xf32, #tpu.memory_space<vmem>>, vector<64x128xf32>
    tpu.vector_store %arg5[%c0_63, %c0_64], %54 {strides = array<i32>} : memref<64x128xf32, #tpu.memory_space<vmem>>, vector<64x128xf32>,
    %c0_65 = arith.constant 0 : index
    %c18_66 = arith.constant 18 : index
    %c1_67 = arith.constant 1 : index
    %c0_68 = arith.constant 0 : index
    %56 = vector.load %arg2[%c0_65, %c18_66, %c1_67, %c0_68] : memref<1x36x9x4xf32, #tpu.memory_space<vmem>>, vector<1x8x8x4xf32>
    %57 = vector.shape_cast %56 : vector<1x8x8x4xf32> to vector<8x8x4xf32>
    %c0_69 = arith.constant 0 : index
    %c0_70 = arith.constant 0 : index
    %58 = vector.load %arg5[%c0_69, %c0_70] : memref<64x128xf32, #tpu.memory_space<vmem>>, vector<64x128xf32>
    %59 = vector.shape_cast %57 : vector<8x8x4xf32> to vector<64x4xf32>
    %c6 = arith.constant 6 : index
    %c0_71 = arith.constant 0 : index
    %c0_72 = arith.constant 0 : index
    %60 = vector.load %arg3[%c6, %c0_71, %c0_72] : memref<16x4x128xf32, #tpu.memory_space<vmem>>, vector<1x4x128xf32>
    %61 = vector.shape_cast %60 : vector<1x4x128xf32> to vector<4x128xf32>
    %cst_73 = arith.constant dense<0.000000e+00> : vector<64x128xf32>
    %62 = tpu.matmul %59, %61, %cst_73 {dimension_numbers = #tpu.dot_dimension_numbers<[1], [0], [0], [1], [0, 0, 1, 1], [], []>} : vector<64x4xf32>, vector<4x128xf32>, vector<64x128xf32> -> vector<64x128xf32>
    %63 = arith.addf %58, %62 : vector<64x128xf32>
    %c0_74 = arith.constant 0 : index
    %c0_75 = arith.constant 0 : index
    %64 = vector.load %arg5[%c0_74, %c0_75] : memref<64x128xf32, #tpu.memory_space<vmem>>, vector<64x128xf32>
    tpu.vector_store %arg5[%c0_74, %c0_75], %63 {strides = array<i32>} : memref<64x128xf32, #tpu.memory_space<vmem>>, vector<64x128xf32>,
    %c0_76 = arith.constant 0 : index
    %c27_77 = arith.constant 27 : index
    %c1_78 = arith.constant 1 : index
    %c0_79 = arith.constant 0 : index
    %65 = vector.load %arg2[%c0_76, %c27_77, %c1_78, %c0_79] : memref<1x36x9x4xf32, #tpu.memory_space<vmem>>, vector<1x8x8x4xf32>
    %66 = vector.shape_cast %65 : vector<1x8x8x4xf32> to vector<8x8x4xf32>
    %c0_80 = arith.constant 0 : index
    %c0_81 = arith.constant 0 : index
    %67 = vector.load %arg5[%c0_80, %c0_81] : memref<64x128xf32, #tpu.memory_space<vmem>>, vector<64x128xf32>
    %68 = vector.shape_cast %66 : vector<8x8x4xf32> to vector<64x4xf32>
    %c7 = arith.constant 7 : index
    %c0_82 = arith.constant 0 : index
    %c0_83 = arith.constant 0 : index
    %69 = vector.load %arg3[%c7, %c0_82, %c0_83] : memref<16x4x128xf32, #tpu.memory_space<vmem>>, vector<1x4x128xf32>
    %70 = vector.shape_cast %69 : vector<1x4x128xf32> to vector<4x128xf32>
    %cst_84 = arith.constant dense<0.000000e+00> : vector<64x128xf32>
    %71 = tpu.matmul %68, %70, %cst_84 {dimension_numbers = #tpu.dot_dimension_numbers<[1], [0], [0], [1], [0, 0, 1, 1], [], []>} : vector<64x4xf32>, vector<4x128xf32>, vector<64x128xf32> -> vector<64x128xf32>
    %72 = arith.addf %67, %71 : vector<64x128xf32>
    %c0_85 = arith.constant 0 : index
    %c0_86 = arith.constant 0 : index
    %73 = vector.load %arg5[%c0_85, %c0_86] : memref<64x128xf32, #tpu.memory_space<vmem>>, vector<64x128xf32>
    tpu.vector_store %arg5[%c0_85, %c0_86], %72 {strides = array<i32>} : memref<64x128xf32, #tpu.memory_space<vmem>>, vector<64x128xf32>,
    %c0_87 = arith.constant 0 : index
    %c1_88 = arith.constant 1 : index
    %c0_89 = arith.constant 0 : index
    %c0_90 = arith.constant 0 : index
    %74 = vector.load %arg2[%c0_87, %c1_88, %c0_89, %c0_90] : memref<1x36x9x4xf32, #tpu.memory_space<vmem>>, vector<1x8x8x4xf32>
    %75 = vector.shape_cast %74 : vector<1x8x8x4xf32> to vector<8x8x4xf32>
    %c0_91 = arith.constant 0 : index
    %c0_92 = arith.constant 0 : index
    %76 = vector.load %arg5[%c0_91, %c0_92] : memref<64x128xf32, #tpu.memory_space<vmem>>, vector<64x128xf32>
    %77 = vector.shape_cast %75 : vector<8x8x4xf32> to vector<64x4xf32>
    %c8 = arith.constant 8 : index
    %c0_93 = arith.constant 0 : index
    %c0_94 = arith.constant 0 : index
    %78 = vector.load %arg3[%c8, %c0_93, %c0_94] : memref<16x4x128xf32, #tpu.memory_space<vmem>>, vector<1x4x128xf32>
    %79 = vector.shape_cast %78 : vector<1x4x128xf32> to vector<4x128xf32>
    %cst_95 = arith.constant dense<0.000000e+00> : vector<64x128xf32>
    %80 = tpu.matmul %77, %79, %cst_95 {dimension_numbers = #tpu.dot_dimension_numbers<[1], [0], [0], [1], [0, 0, 1, 1], [], []>} : vector<64x4xf32>, vector<4x128xf32>, vector<64x128xf32> -> vector<64x128xf32>
    %81 = arith.addf %76, %80 : vector<64x128xf32>
    %c0_96 = arith.constant 0 : index
    %c0_97 = arith.constant 0 : index
    %82 = vector.load %arg5[%c0_96, %c0_97] : memref<64x128xf32, #tpu.memory_space<vmem>>, vector<64x128xf32>
    tpu.vector_store %arg5[%c0_96, %c0_97], %81 {strides = array<i32>} : memref<64x128xf32, #tpu.memory_space<vmem>>, vector<64x128xf32>,
    %c0_98 = arith.constant 0 : index
    %c10 = arith.constant 10 : index
    %c0_99 = arith.constant 0 : index
    %c0_100 = arith.constant 0 : index
    %83 = vector.load %arg2[%c0_98, %c10, %c0_99, %c0_100] : memref<1x36x9x4xf32, #tpu.memory_space<vmem>>, vector<1x8x8x4xf32>
    %84 = vector.shape_cast %83 : vector<1x8x8x4xf32> to vector<8x8x4xf32>
    %c0_101 = arith.constant 0 : index
    %c0_102 = arith.constant 0 : index
    %85 = vector.load %arg5[%c0_101, %c0_102] : memref<64x128xf32, #tpu.memory_space<vmem>>, vector<64x128xf32>
    %86 = vector.shape_cast %84 : vector<8x8x4xf32> to vector<64x4xf32>
    %c9_103 = arith.constant 9 : index
    %c0_104 = arith.constant 0 : index
    %c0_105 = arith.constant 0 : index
    %87 = vector.load %arg3[%c9_103, %c0_104, %c0_105] : memref<16x4x128xf32, #tpu.memory_space<vmem>>, vector<1x4x128xf32>
    %88 = vector.shape_cast %87 : vector<1x4x128xf32> to vector<4x128xf32>
    %cst_106 = arith.constant dense<0.000000e+00> : vector<64x128xf32>
    %89 = tpu.matmul %86, %88, %cst_106 {dimension_numbers = #tpu.dot_dimension_numbers<[1], [0], [0], [1], [0, 0, 1, 1], [], []>} : vector<64x4xf32>, vector<4x128xf32>, vector<64x128xf32> -> vector<64x128xf32>
    %90 = arith.addf %85, %89 : vector<64x128xf32>
    %c0_107 = arith.constant 0 : index
    %c0_108 = arith.constant 0 : index
    %91 = vector.load %arg5[%c0_107, %c0_108] : memref<64x128xf32, #tpu.memory_space<vmem>>, vector<64x128xf32>
    tpu.vector_store %arg5[%c0_107, %c0_108], %90 {strides = array<i32>} : memref<64x128xf32, #tpu.memory_space<vmem>>, vector<64x128xf32>,
    %c0_109 = arith.constant 0 : index
    %c1_110 = arith.constant 1 : index
    %c1_111 = arith.constant 1 : index
    %c0_112 = arith.constant 0 : index
    %92 = vector.load %arg2[%c0_109, %c1_110, %c1_111, %c0_112] : memref<1x36x9x4xf32, #tpu.memory_space<vmem>>, vector<1x8x8x4xf32>
    %93 = vector.shape_cast %92 : vector<1x8x8x4xf32> to vector<8x8x4xf32>
    %c0_113 = arith.constant 0 : index
    %c0_114 = arith.constant 0 : index
    %94 = vector.load %arg5[%c0_113, %c0_114] : memref<64x128xf32, #tpu.memory_space<vmem>>, vector<64x128xf32>
    %95 = vector.shape_cast %93 : vector<8x8x4xf32> to vector<64x4xf32>
    %c10_115 = arith.constant 10 : index
    %c0_116 = arith.constant 0 : index
    %c0_117 = arith.constant 0 : index
    %96 = vector.load %arg3[%c10_115, %c0_116, %c0_117] : memref<16x4x128xf32, #tpu.memory_space<vmem>>, vector<1x4x128xf32>
    %97 = vector.shape_cast %96 : vector<1x4x128xf32> to vector<4x128xf32>
    %cst_118 = arith.constant dense<0.000000e+00> : vector<64x128xf32>
    %98 = tpu.matmul %95, %97, %cst_118 {dimension_numbers = #tpu.dot_dimension_numbers<[1], [0], [0], [1], [0, 0, 1, 1], [], []>} : vector<64x4xf32>, vector<4x128xf32>, vector<64x128xf32> -> vector<64x128xf32>
    %99 = arith.addf %94, %98 : vector<64x128xf32>
    %c0_119 = arith.constant 0 : index
    %c0_120 = arith.constant 0 : index
    %100 = vector.load %arg5[%c0_119, %c0_120] : memref<64x128xf32, #tpu.memory_space<vmem>>, vector<64x128xf32>
    tpu.vector_store %arg5[%c0_119, %c0_120], %99 {strides = array<i32>} : memref<64x128xf32, #tpu.memory_space<vmem>>, vector<64x128xf32>,
    %c0_121 = arith.constant 0 : index
    %c10_122 = arith.constant 10 : index
    %c1_123 = arith.constant 1 : index
    %c0_124 = arith.constant 0 : index
    %101 = vector.load %arg2[%c0_121, %c10_122, %c1_123, %c0_124] : memref<1x36x9x4xf32, #tpu.memory_space<vmem>>, vector<1x8x8x4xf32>
    %102 = vector.shape_cast %101 : vector<1x8x8x4xf32> to vector<8x8x4xf32>
    %c0_125 = arith.constant 0 : index
    %c0_126 = arith.constant 0 : index
    %103 = vector.load %arg5[%c0_125, %c0_126] : memref<64x128xf32, #tpu.memory_space<vmem>>, vector<64x128xf32>
    %104 = vector.shape_cast %102 : vector<8x8x4xf32> to vector<64x4xf32>
    %c11 = arith.constant 11 : index
    %c0_127 = arith.constant 0 : index
    %c0_128 = arith.constant 0 : index
    %105 = vector.load %arg3[%c11, %c0_127, %c0_128] : memref<16x4x128xf32, #tpu.memory_space<vmem>>, vector<1x4x128xf32>
    %106 = vector.shape_cast %105 : vector<1x4x128xf32> to vector<4x128xf32>
    %cst_129 = arith.constant dense<0.000000e+00> : vector<64x128xf32>
    %107 = tpu.matmul %104, %106, %cst_129 {dimension_numbers = #tpu.dot_dimension_numbers<[1], [0], [0], [1], [0, 0, 1, 1], [], []>} : vector<64x4xf32>, vector<4x128xf32>, vector<64x128xf32> -> vector<64x128xf32>
    %108 = arith.addf %103, %107 : vector<64x128xf32>
    %c0_130 = arith.constant 0 : index
    %c0_131 = arith.constant 0 : index
    %109 = vector.load %arg5[%c0_130, %c0_131] : memref<64x128xf32, #tpu.memory_space<vmem>>, vector<64x128xf32>
    tpu.vector_store %arg5[%c0_130, %c0_131], %108 {strides = array<i32>} : memref<64x128xf32, #tpu.memory_space<vmem>>, vector<64x128xf32>,
    %c0_132 = arith.constant 0 : index
    %c19 = arith.constant 19 : index
    %c0_133 = arith.constant 0 : index
    %c0_134 = arith.constant 0 : index
    %110 = vector.load %arg2[%c0_132, %c19, %c0_133, %c0_134] : memref<1x36x9x4xf32, #tpu.memory_space<vmem>>, vector<1x8x8x4xf32>
    %111 = vector.shape_cast %110 : vector<1x8x8x4xf32> to vector<8x8x4xf32>
    %c0_135 = arith.constant 0 : index
    %c0_136 = arith.constant 0 : index
    %112 = vector.load %arg5[%c0_135, %c0_136] : memref<64x128xf32, #tpu.memory_space<vmem>>, vector<64x128xf32>
    %113 = vector.shape_cast %111 : vector<8x8x4xf32> to vector<64x4xf32>
    %c12 = arith.constant 12 : index
    %c0_137 = arith.constant 0 : index
    %c0_138 = arith.constant 0 : index
    %114 = vector.load %arg3[%c12, %c0_137, %c0_138] : memref<16x4x128xf32, #tpu.memory_space<vmem>>, vector<1x4x128xf32>
    %115 = vector.shape_cast %114 : vector<1x4x128xf32> to vector<4x128xf32>
    %cst_139 = arith.constant dense<0.000000e+00> : vector<64x128xf32>
    %116 = tpu.matmul %113, %115, %cst_139 {dimension_numbers = #tpu.dot_dimension_numbers<[1], [0], [0], [1], [0, 0, 1, 1], [], []>} : vector<64x4xf32>, vector<4x128xf32>, vector<64x128xf32> -> vector<64x128xf32>
    %117 = arith.addf %112, %116 : vector<64x128xf32>
    %c0_140 = arith.constant 0 : index
    %c0_141 = arith.constant 0 : index
    %118 = vector.load %arg5[%c0_140, %c0_141] : memref<64x128xf32, #tpu.memory_space<vmem>>, vector<64x128xf32>
    tpu.vector_store %arg5[%c0_140, %c0_141], %117 {strides = array<i32>} : memref<64x128xf32, #tpu.memory_space<vmem>>, vector<64x128xf32>,
    %c0_142 = arith.constant 0 : index
    %c28 = arith.constant 28 : index
    %c0_143 = arith.constant 0 : index
    %c0_144 = arith.constant 0 : index
    %119 = vector.load %arg2[%c0_142, %c28, %c0_143, %c0_144] : memref<1x36x9x4xf32, #tpu.memory_space<vmem>>, vector<1x8x8x4xf32>
    %120 = vector.shape_cast %119 : vector<1x8x8x4xf32> to vector<8x8x4xf32>
    %c0_145 = arith.constant 0 : index
    %c0_146 = arith.constant 0 : index
    %121 = vector.load %arg5[%c0_145, %c0_146] : memref<64x128xf32, #tpu.memory_space<vmem>>, vector<64x128xf32>
    %122 = vector.shape_cast %120 : vector<8x8x4xf32> to vector<64x4xf32>
    %c13 = arith.constant 13 : index
    %c0_147 = arith.constant 0 : index
    %c0_148 = arith.constant 0 : index
    %123 = vector.load %arg3[%c13, %c0_147, %c0_148] : memref<16x4x128xf32, #tpu.memory_space<vmem>>, vector<1x4x128xf32>
    %124 = vector.shape_cast %123 : vector<1x4x128xf32> to vector<4x128xf32>
    %cst_149 = arith.constant dense<0.000000e+00> : vector<64x128xf32>
    %125 = tpu.matmul %122, %124, %cst_149 {dimension_numbers = #tpu.dot_dimension_numbers<[1], [0], [0], [1], [0, 0, 1, 1], [], []>} : vector<64x4xf32>, vector<4x128xf32>, vector<64x128xf32> -> vector<64x128xf32>
    %126 = arith.addf %121, %125 : vector<64x128xf32>
    %c0_150 = arith.constant 0 : index
    %c0_151 = arith.constant 0 : index
    %127 = vector.load %arg5[%c0_150, %c0_151] : memref<64x128xf32, #tpu.memory_space<vmem>>, vector<64x128xf32>
    tpu.vector_store %arg5[%c0_150, %c0_151], %126 {strides = array<i32>} : memref<64x128xf32, #tpu.memory_space<vmem>>, vector<64x128xf32>,
    %c0_152 = arith.constant 0 : index
    %c19_153 = arith.constant 19 : index
    %c1_154 = arith.constant 1 : index
    %c0_155 = arith.constant 0 : index
    %128 = vector.load %arg2[%c0_152, %c19_153, %c1_154, %c0_155] : memref<1x36x9x4xf32, #tpu.memory_space<vmem>>, vector<1x8x8x4xf32>
    %129 = vector.shape_cast %128 : vector<1x8x8x4xf32> to vector<8x8x4xf32>
    %c0_156 = arith.constant 0 : index
    %c0_157 = arith.constant 0 : index
    %130 = vector.load %arg5[%c0_156, %c0_157] : memref<64x128xf32, #tpu.memory_space<vmem>>, vector<64x128xf32>
    %131 = vector.shape_cast %129 : vector<8x8x4xf32> to vector<64x4xf32>
    %c14 = arith.constant 14 : index
    %c0_158 = arith.constant 0 : index
    %c0_159 = arith.constant 0 : index
    %132 = vector.load %arg3[%c14, %c0_158, %c0_159] : memref<16x4x128xf32, #tpu.memory_space<vmem>>, vector<1x4x128xf32>
    %133 = vector.shape_cast %132 : vector<1x4x128xf32> to vector<4x128xf32>
    %cst_160 = arith.constant dense<0.000000e+00> : vector<64x128xf32>
    %134 = tpu.matmul %131, %133, %cst_160 {dimension_numbers = #tpu.dot_dimension_numbers<[1], [0], [0], [1], [0, 0, 1, 1], [], []>} : vector<64x4xf32>, vector<4x128xf32>, vector<64x128xf32> -> vector<64x128xf32>
    %135 = arith.addf %130, %134 : vector<64x128xf32>
    %c0_161 = arith.constant 0 : index
    %c0_162 = arith.constant 0 : index
    %136 = vector.load %arg5[%c0_161, %c0_162] : memref<64x128xf32, #tpu.memory_space<vmem>>, vector<64x128xf32>
    tpu.vector_store %arg5[%c0_161, %c0_162], %135 {strides = array<i32>} : memref<64x128xf32, #tpu.memory_space<vmem>>, vector<64x128xf32>,
    %c0_163 = arith.constant 0 : index
    %c28_164 = arith.constant 28 : index
    %c1_165 = arith.constant 1 : index
    %c0_166 = arith.constant 0 : index
    %137 = vector.load %arg2[%c0_163, %c28_164, %c1_165, %c0_166] : memref<1x36x9x4xf32, #tpu.memory_space<vmem>>, vector<1x8x8x4xf32>
    %138 = vector.shape_cast %137 : vector<1x8x8x4xf32> to vector<8x8x4xf32>
    %c0_167 = arith.constant 0 : index
    %c0_168 = arith.constant 0 : index
    %139 = vector.load %arg5[%c0_167, %c0_168] : memref<64x128xf32, #tpu.memory_space<vmem>>, vector<64x128xf32>
    %140 = vector.shape_cast %138 : vector<8x8x4xf32> to vector<64x4xf32>
    %c15 = arith.constant 15 : index
    %c0_169 = arith.constant 0 : index
    %c0_170 = arith.constant 0 : index
    %141 = vector.load %arg3[%c15, %c0_169, %c0_170] : memref<16x4x128xf32, #tpu.memory_space<vmem>>, vector<1x4x128xf32>
    %142 = vector.shape_cast %141 : vector<1x4x128xf32> to vector<4x128xf32>
    %cst_171 = arith.constant dense<0.000000e+00> : vector<64x128xf32>
    %143 = tpu.matmul %140, %142, %cst_171 {dimension_numbers = #tpu.dot_dimension_numbers<[1], [0], [0], [1], [0, 0, 1, 1], [], []>} : vector<64x4xf32>, vector<4x128xf32>, vector<64x128xf32> -> vector<64x128xf32>
    %144 = arith.addf %139, %143 : vector<64x128xf32>
    %c0_172 = arith.constant 0 : index
    %c0_173 = arith.constant 0 : index
    %145 = vector.load %arg5[%c0_172, %c0_173] : memref<64x128xf32, #tpu.memory_space<vmem>>, vector<64x128xf32>
    tpu.vector_store %arg5[%c0_172, %c0_173], %144 {strides = array<i32>} : memref<64x128xf32, #tpu.memory_space<vmem>>, vector<64x128xf32>,
    %c0_174 = arith.constant 0 : index
    %c0_175 = arith.constant 0 : index
    %146 = vector.load %arg5[%c0_174, %c0_175] : memref<64x128xf32, #tpu.memory_space<vmem>>, vector<64x128xf32>
    %cst_176 = arith.constant dense<0.000000e+00> : vector<128xf32>
    %147 = vector.multi_reduction <add>, %146, %cst_176 [0] : vector<64x128xf32> to vector<128xf32>
    %148 = vector.shape_cast %147 : vector<128xf32> to vector<1x128xf32>
    %cst_177 = arith.constant 6.400000e+01 : f32
    %149 = vector.broadcast %cst_177 : f32 to vector<1x128xf32>
    %150 = arith.divf %148, %149 : vector<1x128xf32>
    %151 = arith.mulf %146, %146 : vector<64x128xf32>
    %cst_178 = arith.constant dense<0.000000e+00> : vector<128xf32>
    %152 = vector.multi_reduction <add>, %151, %cst_178 [0] : vector<64x128xf32> to vector<128xf32>
    %153 = vector.shape_cast %152 : vector<128xf32> to vector<1x128xf32>
    %cst_179 = arith.constant 6.400000e+01 : f32
    %154 = vector.broadcast %cst_179 : f32 to vector<1x128xf32>
    %155 = arith.divf %153, %154 : vector<1x128xf32>
    %156 = arith.mulf %150, %150 : vector<1x128xf32>
    %157 = arith.subf %155, %156 : vector<1x128xf32>
    %cst_180 = arith.constant 0.000000e+00 : f32
    %158 = vector.broadcast %cst_180 : f32 to vector<1x128xf32>
    %159 = arith.maximumf %157, %158 : vector<1x128xf32>
    %cst_181 = arith.constant 9.99999974E-6 : f32
    %160 = vector.broadcast %cst_181 : f32 to vector<1x128xf32>
    %161 = arith.addf %159, %160 : vector<1x128xf32>
    %162 = math.rsqrt %161 : vector<1x128xf32>
    %163 = vector.broadcast %150 : vector<1x128xf32> to vector<64x128xf32>
    %164 = arith.subf %146, %163 : vector<64x128xf32>
    %165 = vector.broadcast %162 : vector<1x128xf32> to vector<64x128xf32>
    %166 = arith.mulf %164, %165 : vector<64x128xf32>
    %cst_182 = arith.constant 0.000000e+00 : f32
    %167 = vector.broadcast %cst_182 : f32 to vector<64x128xf32>
    %168 = arith.cmpf oge, %166, %167 : vector<64x128xf32>
    %cst_183 = arith.constant 2.000000e-01 : f32
    %169 = vector.broadcast %cst_183 : f32 to vector<64x128xf32>
    %170 = arith.mulf %169, %166 : vector<64x128xf32>
    %171 = arith.select %168, %166, %170 : vector<64x128xi1>, vector<64x128xf32>
    %c0_184 = arith.constant 0 : index
    %c0_185 = arith.constant 0 : index
    %c0_186 = arith.constant 0 : index
    %172 = vector.load %arg4[%c0_184, %c0_185, %c0_186] : memref<1x64x128xf32, #tpu.memory_space<vmem>>, vector<1x64x128xf32>
    %173 = vector.shape_cast %172 : vector<1x64x128xf32> to vector<64x128xf32>
    %174 = vector.shape_cast %171 : vector<64x128xf32> to vector<1x64x128xf32>
    tpu.vector_store %arg4[%c0_184, %c0_185, %c0_186], %174 {strides = array<i32>} : memref<1x64x128xf32, #tpu.memory_space<vmem>>, vector<1x64x128xf32>,
    return
  }
  func.func @transform_0(%arg0: i32, %arg1: i32) -> (i32, i32, i32, i32) {
    %c0_i32 = arith.constant 0 : i32
    %c0_i32_0 = arith.constant 0 : i32
    %c0_i32_1 = arith.constant 0 : i32
    %c0_i32_2 = arith.constant 0 : i32
    return %arg0, %c0_i32, %c0_i32_0, %c0_i32_1 : i32, i32, i32, i32
  }
  func.func @transform_1(%arg0: i32, %arg1: i32) -> (i32, i32, i32) {
    %c0_i32 = arith.constant 0 : i32
    %c0_i32_0 = arith.constant 0 : i32
    %c0_i32_1 = arith.constant 0 : i32
    return %c0_i32, %c0_i32_0, %arg1 : i32, i32, i32
  }
  func.func @transform_2(%arg0: i32, %arg1: i32) -> (i32, i32, i32) {
    %c0_i32 = arith.constant 0 : i32
    %c0_i32_0 = arith.constant 0 : i32
    return %arg0, %c0_i32, %arg1 : i32, i32, i32
  }
}

</mosaic_0001>

<bundles_post_ra>
// kernel: tpu_custom_call.1
= control target key start
LH: loop header
LB: loop body
LE: loop exit
PB: predicated region body
PF: predicated region fallthrough
CT: control target
= control target key end

     0   :  { %7 = vsyncpa [#allocation4], 0  ;;  %s3180_s0 = inlined_call_operand.vmem [shape: f32[2,36,9,4], index: 0, kind: input, shape index: {}]   ;;  %s3181_s1 = inlined_call_operand.vmem [shape: f32[16,4,128], index: 1, kind: input, shape index: {}]   ;;  %s3182_s2 = inlined_call_operand.hbm [shape: f32[2,64,128], index: 2, kind: output, shape index: {}]  }
   0x1   :  { %9 = vsyncpa [#allocation4 + $0x1], 0  ;;  %s2484_s9 = smov 0   ;;  %s2486_s10 = smov 0  }
   0x2   :  { %s2488_s11 = smov 0   ;;  %s2490_s12 = smov 0  }
   0x3   :  { %s2492_s13 = smov 0   ;;  %s2494_s14 = smov 0  }
   0x4 LB: > { %s2038_s15 = sadd.s32 4294967295, %s2464_s14   ;;  %s2039_s16 = sadd.s32 4294967294, %s2464_s14   ;;  %s2464_s14 = sphi %s2494_s14, %s15_s14   ;;  %s2460_s13 = sphi %s2492_s13, %s3192_s13   ;;  %s2456_s12 = sphi %s2490_s12, %s3191_s12   ;;  %s2452_s11 = sphi %s2488_s11, %s3190_s11   ;;  %s2448_s10 = sphi %s2486_s10, %s3189_s10   ;;  %s2444_s9 = sphi %s2484_s9, %s3188_s9  }
   0x5   : > { %s27_s17 = sadd.s32 1, %s2460_s13  ;;  %s88_s18 = sadd.s32 1, %s2452_s11 }
   0x6   : > { %p29_p0 = scmp.ge.s32.totalorder %s27_s17, 2  ;;  %p98_p1 = scmp.ne.s32.totalorder %s2452_s11, %s2448_s10 }
   0x7   : > { %p99_p2 = scmp.eq.s32.totalorder %s2038_s15, 1  ;;  %p104_p3 = scmp.ne.s32.totalorder %s2448_s10, %s2444_s9 }
   0x8   : > { %s3194_s17 = smov (%p29_p0, %s27_s17), 0  ;;  %p105_p5 = scmp.eq.s32.totalorder %s2039_s16, 1 }
   0x9   : > { %p2524_p4 = por %p99_p2, %p98_p1  ;;  %s83_s20 = ssub.s32 %s2460_s13, %s3194_s17 }
   0xa   : > { %p2043_p6 = scmp.ge.s32.totalorder %s2464_s14, 1  ;;  %p86_p7 = scmp.eq.s32.totalorder %s83_s20, 0 }
   0xb   : > { %p2531_p8 = por %p105_p5, %p104_p3  ;;  %p138_p9 = scmp.lt.s32.totalorder %s2464_s14, 3 }
   0xc   : > { %s2537_s22 = scalar_select %p86_p7, %s2452_s11, %s88_s18  }
   0xd   : > { %p139_p10 = pnand %p2043_p6, %p138_p9 }
   0xf   : > { %142 = sbr.rel (%p139_p10) target bundleno = 472 (0x1d8), region = 28 }
  0x14   : > { %v197_v0 = vld [vmem:[%s3181_s1] sm:$0xf]  ;;  %vm223_vm0 = vcmask 1043456   ;;  %v2073_v1 = vld [vmem:[%s3181_s1 + $0x8] sm:$0xf]  ;;  %p164_p11 = scmp.lt.s32.totalorder %s2456_s12, 1 }
  0x15   : > { %2046 = vmatpush.msk.msra.mxu0 %vm223_vm0, %v197_v0  ;;  %2074 = vmatpush.msk.msra.mxu2 %vm223_vm0, %v2073_v1  ;;  %v2145_v2 = vld [vmem:[%s3181_s1 + $0x18] sm:$0xf]  ;;  %v2063_v3 = vld [vmem:[%s3181_s1 + $0x4] sm:$0xf]  ;;  %v2091_v4 = vld [vmem:[%s3181_s1 + $0xc] sm:$0xf] }
  0x16   : > { %s165_s3 = scalar_select %p164_p11, %s2456_s12, 1  ;;  %2064 = vmatpush.msk.msra.mxu1 %vm223_vm0, %v2063_v3  ;;  %v2109_v5 = vld [vmem:[%s3181_s1 + $0x10] sm:$0xf]  ;;  %2092 = vmatpush.msk.msra.mxu3 %vm223_vm0, %v2091_v4  ;;  %v2163_v6 = vld [vmem:[%s3181_s1 + $0x1c] sm:$0xf]  ;;  %vm198_vm1 = vcmask 31744  }
  0x17   : > { %2146 = vmatpush.msk.msrb.mxu2 %vm223_vm0, %v2145_v2  ;;  %2110 = vmatpush.msk.msrb.mxu0 %vm223_vm0, %v2109_v5  ;;  %v2127_v7 = vld [vmem:[%s3181_s1 + $0x14] sm:$0xf]  ;;  %v2217_v28 = vld [vmem:[%s3181_s1 + $0x28] sm:$0xf]  ;;  %v2181_v29 = vld [vmem:[%s3181_s1 + $0x20] sm:$0xf] }
  0x18   : > { %s2323_s20 = smul.u32 576, %s165_s3  ;;  %2164 = vmatpush.msk.msrb.mxu3 %vm223_vm0, %v2163_v6  ;;  %2128 = vmatpush.msk.msrb.mxu1 %vm223_vm0, %v2127_v7  ;;  %v2235_v30 = vld [vmem:[%s3181_s1 + $0x2c] sm:$0xf]  ;;  %v2199_v31 = vld [vmem:[%s3181_s1 + $0x24] sm:$0xf]  ;;  %s161_s24 = sand.u32 1, %s2448_s10  }
  0x19   : > { %v2289_v0 = vld [vmem:[%s3181_s1 + $0x38] sm:$0xf]  ;;  %v2253_v1 = vld [vmem:[%s3181_s1 + $0x30] sm:$0xf]  ;;  %v2307_v2 = vld [vmem:[%s3181_s1 + $0x3c] sm:$0xf] }
  0x1a   : > { %s2576_s25 = scalar_lea.vmem %s3180_s0, %s2323_s20  ;;  %v2271_v3 = vld [vmem:[%s3181_s1 + $0x34] sm:$0xf]  ;;  %s2322_s26 = sshll.u32 %s2456_s12, 6 }
  0x1b   : > { %v181_v8 = vld [vmem:[%s2576_s25] sm:$0xff]  ;;  %v2055_v10 = vld [vmem:[%s2576_s25 + $0x90] sm:$0xff]  ;;  %s1947_s29 = scalar_lea.hbm %s3182_s2, %s2322_s26  ;;  %s1935_s4 = scalar_lea.sflag [#allocation4], %s161_s24 }
  0x1c   : > { %v387_v9 = vld [vmem:[%s2576_s25 + $0x1] sm:$0xff]  ;;  %2047 = vmatmul.msk.f32.vlgmr.msra.gmra.mxu0 %vm198_vm1, %v181_v8  ;;  %v2083_v11 = vld [vmem:[%s2576_s25 + $0x91] sm:$0xff]  ;;  %2065 = vmatmul.msk.f32.vlgmr.msra.gmra.mxu1 %vm198_vm1, %v2055_v10  ;;  %s1950_s3 = sshll.u32 %s1947_s29, 4  ;;  %s2406_s15 = scalar_lea.hbm %s3182_s2, 128  ;;  %s1951_s3 = int_to_ptr.hbm [resolvable:$true] %s1950_s3 }
  0x1d   : > { %2075 = vmatmul.msk.f32.vlgmr.msra.gmra.mxu2 %vm198_vm1, %v387_v9  ;;  %2093 = vmatmul.msk.f32.vlgmr.msra.gmra.mxu3 %vm198_vm1, %v2083_v11  ;;  %v2587_v12 = vld [vmem:[%s2576_s25 + $0x10] sm:$0xff]  ;;  %v2593_v14 = vld [vmem:[%s2576_s25 + $0xa0] sm:$0xff]  ;;  %s2400_s5 = sshra.s32 %s1951_s3, 4  ;;  %s2401_s5 = int_to_ptr.hbm [resolvable:$true] %s2400_s5 }
  0x1e   : > { %v2590_v13 = vld [vmem:[%s2576_s25 + $0x11] sm:$0xff]  ;;  %v2596_v15 = vld [vmem:[%s2576_s25 + $0xa1] sm:$0xff]  ;;  %2218 = vmatpush.msk.msra.mxu2 %vm223_vm0, %v2217_v28  ;;  %2182 = vmatpush.msk.msra.mxu0 %vm223_vm0, %v2181_v29  ;;  %s2402_s6 = scalar_lea.hbm %s2401_s5, 64  ;;  %p2407_p1 = scmp.lt.s32.totalorder %s2401_s5, %s3182_s2 }
  0x1f   : > { %v2607_v16 = vld [vmem:[%s2576_s25 + $0x20] sm:$0xff]  ;;  %v2613_v18 = vld [vmem:[%s2576_s25 + $0xb0] sm:$0xff]  ;;  %2236 = vmatpush.msk.msra.mxu3 %vm223_vm0, %v2235_v30  ;;  %2200 = vmatpush.msk.msra.mxu1 %vm223_vm0, %v2199_v31  ;;  %p2403_p12 = scmp.ne.s32.totalorder %s2401_s5, %s2402_s6  ;;  %p2408_p2 = scmp.lt.s32.totalorder %s2406_s15, %s2402_s6 }
  0x20   : > { %v2610_v17 = vld [vmem:[%s2576_s25 + $0x21] sm:$0xff]  ;;  %v2616_v19 = vld [vmem:[%s2576_s25 + $0xb1] sm:$0xff] }
  0x21   : > { %v2627_v20 = vld [vmem:[%s2576_s25 + $0x30] sm:$0xff]  ;;  %v2633_v22 = vld [vmem:[%s2576_s25 + $0xc0] sm:$0xff]  ;;  %p2404_p13 = pnand %p2403_p12, %p2524_p4  ;;  %p2409_p3 = por %p2408_p2, %p2407_p1 }
  0x22   : > { %v2630_v21 = vld [vmem:[%s2576_s25 + $0x31] sm:$0xff]  ;;  %v2636_v23 = vld [vmem:[%s2576_s25 + $0xc1] sm:$0xff] }
  0x23   : > { %v2647_v24 = vld [vmem:[%s2576_s25 + $0x40] sm:$0xff]  ;;  %v2653_v26 = vld [vmem:[%s2576_s25 + $0xd0] sm:$0xff]  ;;  %p2405_p0 = pneg %p2404_p13 }
  0x24   : > { %2048 = vmatmul.msk.f32.gmra.mxu0 %vm198_vm1, %v2587_v12  ;;  %2066 = vmatmul.msk.f32.gmra.mxu1 %vm198_vm1, %v2593_v14  ;;  %v2650_v25 = vld [vmem:[%s2576_s25 + $0x41] sm:$0xff]  ;;  %v2656_v27 = vld [vmem:[%s2576_s25 + $0xd1] sm:$0xff] }
  0x25   : > { %2076 = vmatmul.msk.f32.gmra.mxu2 %vm198_vm1, %v2590_v13  ;;  %2094 = vmatmul.msk.f32.gmra.mxu3 %vm198_vm1, %v2596_v15  ;;  %v2683_v32 = vld [vmem:[%s2576_s25 + $0x50] sm:$0xff]  ;;  %v2689_v34 = vld [vmem:[%s2576_s25 + $0xe0] sm:$0xff]  ;;  %p2410_p5 = pnand %p2409_p3, %p2405_p0 }
  0x26   : > { %v2686_v33 = vld [vmem:[%s2576_s25 + $0x51] sm:$0xff]  ;;  %v2692_v35 = vld [vmem:[%s2576_s25 + $0xe1] sm:$0xff] }
  0x27   : > { %v2703_v36 = vld [vmem:[%s2576_s25 + $0x60] sm:$0xff]  ;;  %v2709_v38 = vld [vmem:[%s2576_s25 + $0xf0] sm:$0xff] }
  0x28   : > { %v2706_v37 = vld [vmem:[%s2576_s25 + $0x61] sm:$0xff]  ;;  %v2712_v39 = vld [vmem:[%s2576_s25 + $0xf1] sm:$0xff] }
  0x29   : > { %v2723_v40 = vld [vmem:[%s2576_s25 + $0x70] sm:$0xff]  ;;  %v2729_v42 = vld [vmem:[%s2576_s25 + $0x100] sm:$0xff] }
  0x2a   : > { %v2726_v41 = vld [vmem:[%s2576_s25 + $0x71] sm:$0xff]  ;;  %v2732_v43 = vld [vmem:[%s2576_s25 + $0x101] sm:$0xff] }
  0x2b   : > { %v2101_v44 = vld [vmem:[%s2576_s25 + $0x120] sm:$0xff]  ;;  %v2119_v46 = vld [vmem:[%s2576_s25 + $0x1b0] sm:$0xff] }
  0x2c   : > { %2049 = vmatmul.msk.f32.gmra.mxu0 %vm198_vm1, %v2607_v16  ;;  %2067 = vmatmul.msk.f32.gmra.mxu1 %vm198_vm1, %v2613_v18  ;;  %v2137_v45 = vld [vmem:[%s2576_s25 + $0x121] sm:$0xff]  ;;  %v2155_v47 = vld [vmem:[%s2576_s25 + $0x1b1] sm:$0xff] }
  0x2d   : > { %2077 = vmatmul.msk.f32.gmra.mxu2 %vm198_vm1, %v2610_v17  ;;  %2095 = vmatmul.msk.f32.gmra.mxu3 %vm198_vm1, %v2616_v19  ;;  %v2751_v48 = vld [vmem:[%s2576_s25 + $0x130] sm:$0xff]  ;;  %v2757_v50 = vld [vmem:[%s2576_s25 + $0x1c0] sm:$0xff] }
  0x2e   : > { %v2754_v49 = vld [vmem:[%s2576_s25 + $0x131] sm:$0xff]  ;;  %v2760_v51 = vld [vmem:[%s2576_s25 + $0x1c1] sm:$0xff] }
  0x2f   : > { %v2771_v52 = vld [vmem:[%s2576_s25 + $0x140] sm:$0xff]  ;;  %v2777_v54 = vld [vmem:[%s2576_s25 + $0x1d0] sm:$0xff] }
  0x30   : > { %v2774_v53 = vld [vmem:[%s2576_s25 + $0x141] sm:$0xff]  ;;  %v2780_v55 = vld [vmem:[%s2576_s25 + $0x1d1] sm:$0xff] }
  0x31   : > { %v2791_v56 = vld [vmem:[%s2576_s25 + $0x150] sm:$0xff]  ;;  %v2797_v58 = vld [vmem:[%s2576_s25 + $0x1e0] sm:$0xff] }
  0x32   : > { %v2794_v57 = vld [vmem:[%s2576_s25 + $0x151] sm:$0xff]  ;;  %v2800_v59 = vld [vmem:[%s2576_s25 + $0x1e1] sm:$0xff] }
  0x33   : > { %v2811_v60 = vld [vmem:[%s2576_s25 + $0x160] sm:$0xff]  ;;  %v2817_v62 = vld [vmem:[%s2576_s25 + $0x1f0] sm:$0xff] }
  0x34   : > { %2050 = vmatmul.msk.f32.gmra.mxu0 %vm198_vm1, %v2627_v20  ;;  %2068 = vmatmul.msk.f32.gmra.mxu1 %vm198_vm1, %v2633_v22  ;;  %v2814_v61 = vld [vmem:[%s2576_s25 + $0x161] sm:$0xff]  ;;  %v2820_v63 = vld [vmem:[%s2576_s25 + $0x1f1] sm:$0xff] }
  0x35   : > { %2078 = vmatmul.msk.f32.gmra.mxu2 %vm198_vm1, %v2630_v21  ;;  %2096 = vmatmul.msk.f32.gmra.mxu3 %vm198_vm1, %v2636_v23  ;;  %v2846_v4 = vld [vmem:[%s2576_s25 + $0x170] sm:$0xff]  ;;  %v2853_v6 = vld [vmem:[%s2576_s25 + $0x200] sm:$0xff] }
  0x36   : > { %v2849_v5 = vld [vmem:[%s2576_s25 + $0x171] sm:$0xff]  ;;  %v2856_v7 = vld [vmem:[%s2576_s25 + $0x201] sm:$0xff] }
  0x37   : > { %v2867_v8 = vld [vmem:[%s2576_s25 + $0x180] sm:$0xff]  ;;  %v2873_v10 = vld [vmem:[%s2576_s25 + $0x210] sm:$0xff] }
  0x38   : > { %v2870_v9 = vld [vmem:[%s2576_s25 + $0x181] sm:$0xff]  ;;  %v2876_v11 = vld [vmem:[%s2576_s25 + $0x211] sm:$0xff] }
  0x39   : > { %v2887_v28 = vld [vmem:[%s2576_s25 + $0x190] sm:$0xff]  ;;  %v2893_v30 = vld [vmem:[%s2576_s25 + $0x220] sm:$0xff] }
  0x3a   : > { %v2890_v29 = vld [vmem:[%s2576_s25 + $0x191] sm:$0xff]  ;;  %v2896_v31 = vld [vmem:[%s2576_s25 + $0x221] sm:$0xff] }
  0x3b   : > { %3186 = vst [vmem:[#allocation6_spill] sm:$0xff] %v2896_v31 }
  0x3c   : > { %2051 = vmatmul.msk.f32.gmra.mxu0 %vm198_vm1, %v2647_v24  ;;  %2069 = vmatmul.msk.f32.gmra.mxu1 %vm198_vm1, %v2653_v26 }
  0x3d   : > { %2079 = vmatmul.msk.f32.gmra.mxu2 %vm198_vm1, %v2650_v25  ;;  %2097 = vmatmul.msk.f32.gmra.mxu3 %vm198_vm1, %v2656_v27 }
  0x44   : > { %2052 = vmatmul.msk.f32.gmra.mxu0 %vm198_vm1, %v2683_v32  ;;  %2070 = vmatmul.msk.f32.gmra.mxu1 %vm198_vm1, %v2689_v34 }
  0x45   : > { %2080 = vmatmul.msk.f32.gmra.mxu2 %vm198_vm1, %v2686_v33  ;;  %2098 = vmatmul.msk.f32.gmra.mxu3 %vm198_vm1, %v2692_v35 }
  0x4c   : > { %2053 = vmatmul.msk.f32.gmra.mxu0 %vm198_vm1, %v2703_v36  ;;  %2071 = vmatmul.msk.f32.gmra.mxu1 %vm198_vm1, %v2709_v38 }
  0x4d   : > { %2081 = vmatmul.msk.f32.gmra.mxu2 %vm198_vm1, %v2706_v37  ;;  %2099 = vmatmul.msk.f32.gmra.mxu3 %vm198_vm1, %v2712_v39 }
  0x54   : > { %2054 = vmatmul.msk.f32.gmra.mxu0 %vm198_vm1, %v2723_v40  ;;  %2072 = vmatmul.msk.f32.gmra.mxu1 %vm198_vm1, %v2729_v42 }
  0x55   : > { %2082 = vmatmul.msk.f32.gmra.mxu2 %vm198_vm1, %v2726_v41  ;;  %2100 = vmatmul.msk.f32.gmra.mxu3 %vm198_vm1, %v2732_v43 }
  0x5c   : > { %2111 = vmatmul.msk.f32.vlgmr.msrb.gmra.mxu0 %vm198_vm1, %v2101_v44  ;;  %2129 = vmatmul.msk.f32.vlgmr.msrb.gmra.mxu1 %vm198_vm1, %v2119_v46 }
  0x5d   : > { %2147 = vmatmul.msk.f32.vlgmr.msrb.gmra.mxu2 %vm198_vm1, %v2137_v45  ;;  %2165 = vmatmul.msk.f32.vlgmr.msrb.gmra.mxu3 %vm198_vm1, %v2155_v47 }
  0x5e   : > { %2290 = vmatpush.msk.msrb.mxu2 %vm223_vm0, %v2289_v0  ;;  %2254 = vmatpush.msk.msrb.mxu0 %vm223_vm0, %v2253_v1 }
  0x5f   : > { %2308 = vmatpush.msk.msrb.mxu3 %vm223_vm0, %v2307_v2  ;;  %2272 = vmatpush.msk.msrb.mxu1 %vm223_vm0, %v2271_v3 }
  0x64   : > { %2112 = vmatmul.msk.f32.gmra.mxu0 %vm198_vm1, %v2751_v48  ;;  %2130 = vmatmul.msk.f32.gmra.mxu1 %vm198_vm1, %v2757_v50 }
  0x65   : > { %2148 = vmatmul.msk.f32.gmra.mxu2 %vm198_vm1, %v2754_v49  ;;  %2166 = vmatmul.msk.f32.gmra.mxu3 %vm198_vm1, %v2760_v51 }
  0x6c   : > { %2113 = vmatmul.msk.f32.gmra.mxu0 %vm198_vm1, %v2771_v52  ;;  %2131 = vmatmul.msk.f32.gmra.mxu1 %vm198_vm1, %v2777_v54 }
  0x6d   : > { %2149 = vmatmul.msk.f32.gmra.mxu2 %vm198_vm1, %v2774_v53  ;;  %2167 = vmatmul.msk.f32.gmra.mxu3 %vm198_vm1, %v2780_v55 }
  0x74   : > { %2114 = vmatmul.msk.f32.gmra.mxu0 %vm198_vm1, %v2791_v56  ;;  %2132 = vmatmul.msk.f32.gmra.mxu1 %vm198_vm1, %v2797_v58 }
  0x75   : > { %2150 = vmatmul.msk.f32.gmra.mxu2 %vm198_vm1, %v2794_v57  ;;  %2168 = vmatmul.msk.f32.gmra.mxu3 %vm198_vm1, %v2800_v59 }
  0x7c   : > { %2115 = vmatmul.msk.f32.gmra.mxu0 %vm198_vm1, %v2811_v60  ;;  %2133 = vmatmul.msk.f32.gmra.mxu1 %vm198_vm1, %v2817_v62 }
  0x7d   : > { %2151 = vmatmul.msk.f32.gmra.mxu2 %vm198_vm1, %v2814_v61  ;;  %2169 = vmatmul.msk.f32.gmra.mxu3 %vm198_vm1, %v2820_v63 }
  0x84   : > { %2116 = vmatmul.msk.f32.gmra.mxu0 %vm198_vm1, %v2846_v4  ;;  %2134 = vmatmul.msk.f32.gmra.mxu1 %vm198_vm1, %v2853_v6 }
  0x85   : > { %2152 = vmatmul.msk.f32.gmra.mxu2 %vm198_vm1, %v2849_v5  ;;  %2170 = vmatmul.msk.f32.gmra.mxu3 %vm198_vm1, %v2856_v7 }
  0x8c   : > { %2117 = vmatmul.msk.f32.gmra.mxu0 %vm198_vm1, %v2867_v8  ;;  %2135 = vmatmul.msk.f32.gmra.mxu1 %vm198_vm1, %v2873_v10 }
  0x8d   : > { %2153 = vmatmul.msk.f32.gmra.mxu2 %vm198_vm1, %v2870_v9  ;;  %2171 = vmatmul.msk.f32.gmra.mxu3 %vm198_vm1, %v2876_v11 }
  0x94   : > { %2118 = vmatmul.msk.f32.gmra.mxu0 %vm198_vm1, %v2887_v28  ;;  %2136 = vmatmul.msk.f32.gmra.mxu1 %vm198_vm1, %v2893_v30 }
  0x95   : > { %2154 = vmatmul.msk.f32.gmra.mxu2 %vm198_vm1, %v2890_v29  ;;  %2172 = vmatmul.msk.f32.gmra.mxu3 %vm198_vm1, %v2896_v31 }
  0x99   : > { %v244_v44 = vpop.f32.mrf.mxu0  ;;  %v347_v45 = vpop.f32.mrf.mxu1 }
  0x9a   : > { %v371_v46 = vadd.f32 %v347_v45, %v244_v44 }
  0x9c   : > { %2183 = vmatmul.msk.f32.vlgmr.msra.gmra.mxu0 %vm198_vm1, %v2587_v12  ;;  %2201 = vmatmul.msk.f32.vlgmr.msra.gmra.mxu1 %vm198_vm1, %v2593_v14 }
  0x9d   : > { %2219 = vmatmul.msk.f32.vlgmr.msra.gmra.mxu2 %vm198_vm1, %v2590_v13  ;;  %2237 = vmatmul.msk.f32.vlgmr.msra.gmra.mxu3 %vm198_vm1, %v2596_v15 }
  0xa0   : > { %v449_v47 = vpop.f32.mrf.mxu2  ;;  %v551_v1 = vpop.f32.mrf.mxu3 }
  0xa1   : > { %v473_v0 = vadd.f32 %v449_v47, %v371_v46  ;;  %v247_v2 = vpop.f32.mrf.mxu0  ;;  %v350_v31 = vpop.f32.mrf.mxu1 }
  0xa2   : > { %v372_v12 = vadd.f32 %v350_v31, %v247_v2 }
  0xa3   : > { %v2914_v3 = vadd.f32 %v551_v1, %v473_v0 }
  0xa4   : > { %2184 = vmatmul.msk.f32.gmra.mxu0 %vm198_vm1, %v2607_v16  ;;  %2202 = vmatmul.msk.f32.gmra.mxu1 %vm198_vm1, %v2613_v18 }
  0xa5   : > { %2220 = vmatmul.msk.f32.gmra.mxu2 %vm198_vm1, %v2610_v17  ;;  %2238 = vmatmul.msk.f32.gmra.mxu3 %vm198_vm1, %v2616_v19 }
  0xa8   : > { %v452_v13 = vpop.f32.mrf.mxu2  ;;  %v554_v15 = vpop.f32.mrf.mxu3 }
  0xa9   : > { %v474_v14 = vadd.f32 %v452_v13, %v372_v12  ;;  %v250_v44 = vpop.f32.mrf.mxu0  ;;  %v353_v46 = vpop.f32.mrf.mxu1 }
  0xaa   : > { %v373_v16 = vadd.f32 %v353_v46, %v250_v44 }
  0xab   : > { %v2924_v45 = vadd.f32 %v554_v15, %v474_v14 }
  0xac   : > { %2185 = vmatmul.msk.f32.gmra.mxu0 %vm198_vm1, %v2627_v20  ;;  %2203 = vmatmul.msk.f32.gmra.mxu1 %vm198_vm1, %v2633_v22 }
  0xad   : > { %2221 = vmatmul.msk.f32.gmra.mxu2 %vm198_vm1, %v2630_v21  ;;  %2239 = vmatmul.msk.f32.gmra.mxu3 %vm198_vm1, %v2636_v23 }
  0xb0   : > { %v455_v17 = vpop.f32.mrf.mxu2  ;;  %v557_v19 = vpop.f32.mrf.mxu3 }
  0xb1   : > { %v475_v18 = vadd.f32 %v455_v17, %v373_v16  ;;  %v253_v31 = vpop.f32.mrf.mxu0  ;;  %v356_v0 = vpop.f32.mrf.mxu1 }
  0xb2   : > { %v374_v20 = vadd.f32 %v356_v0, %v253_v31 }
  0xb3   : > { %v2934_v47 = vadd.f32 %v557_v19, %v475_v18  ;;  %v2180_v18 = vld [vmem:[%s2576_s25 + $0x80] sm:$0xff] }
  0xb4   : > { %2186 = vmatmul.msk.f32.gmra.mxu0 %vm198_vm1, %v2647_v24  ;;  %2204 = vmatmul.msk.f32.gmra.mxu1 %vm198_vm1, %v2653_v26  ;;  %v2216_v19 = vld [vmem:[%s2576_s25 + $0x81] sm:$0xff] }
  0xb5   : > { %2222 = vmatmul.msk.f32.gmra.mxu2 %vm198_vm1, %v2650_v25  ;;  %2240 = vmatmul.msk.f32.gmra.mxu3 %vm198_vm1, %v2656_v27 }
  0xb8   : > { %v458_v21 = vpop.f32.mrf.mxu2  ;;  %v560_v23 = vpop.f32.mrf.mxu3 }
  0xb9   : > { %v476_v22 = vadd.f32 %v458_v21, %v374_v20  ;;  %v256_v1 = vpop.f32.mrf.mxu0  ;;  %v359_v12 = vpop.f32.mrf.mxu1  ;;  %v2234_v20 = vld [vmem:[%s2576_s25 + $0x111] sm:$0xff] }
  0xba   : > { %v375_v24 = vadd.f32 %v359_v12, %v256_v1 }
  0xbb   : > { %v2944_v2 = vadd.f32 %v560_v23, %v476_v22 }
  0xbc   : > { %2187 = vmatmul.msk.f32.gmra.mxu0 %vm198_vm1, %v2683_v32  ;;  %2205 = vmatmul.msk.f32.gmra.mxu1 %vm198_vm1, %v2689_v34 }
  0xbd   : > { %2223 = vmatmul.msk.f32.gmra.mxu2 %vm198_vm1, %v2686_v33  ;;  %2241 = vmatmul.msk.f32.gmra.mxu3 %vm198_vm1, %v2692_v35 }
  0xc0   : > { %v461_v25 = vpop.f32.mrf.mxu2  ;;  %v563_v27 = vpop.f32.mrf.mxu3 }
  0xc1   : > { %v477_v26 = vadd.f32 %v461_v25, %v375_v24  ;;  %v259_v13 = vpop.f32.mrf.mxu0  ;;  %v362_v15 = vpop.f32.mrf.mxu1 }
  0xc2   : > { %v376_v32 = vadd.f32 %v362_v15, %v259_v13 }
  0xc3   : > { %v2954_v14 = vadd.f32 %v563_v27, %v477_v26 }
  0xc4   : > { %2188 = vmatmul.msk.f32.gmra.mxu0 %vm198_vm1, %v2703_v36  ;;  %2206 = vmatmul.msk.f32.gmra.mxu1 %vm198_vm1, %v2709_v38 }
  0xc5   : > { %2224 = vmatmul.msk.f32.gmra.mxu2 %vm198_vm1, %v2706_v37  ;;  %2242 = vmatmul.msk.f32.gmra.mxu3 %vm198_vm1, %v2712_v39 }
  0xc8   : > { %v464_v33 = vpop.f32.mrf.mxu2  ;;  %v566_v35 = vpop.f32.mrf.mxu3 }
  0xc9   : > { %v478_v34 = vadd.f32 %v464_v33, %v376_v32  ;;  %v262_v44 = vpop.f32.mrf.mxu0  ;;  %v365_v36 = vpop.f32.mrf.mxu1 }
  0xca   : > { %v377_v37 = vadd.f32 %v365_v36, %v262_v44 }
  0xcb   : > { %v2964_v46 = vadd.f32 %v566_v35, %v478_v34 }
  0xcc   : > { %2189 = vmatmul.msk.f32.gmra.mxu0 %vm198_vm1, %v2723_v40  ;;  %2207 = vmatmul.msk.f32.gmra.mxu1 %vm198_vm1, %v2729_v42  ;;  %v2198_v40 = vld [vmem:[%s2576_s25 + $0x110] sm:$0xff] }
  0xcd   : > { %2225 = vmatmul.msk.f32.gmra.mxu2 %vm198_vm1, %v2726_v41  ;;  %2243 = vmatmul.msk.f32.gmra.mxu3 %vm198_vm1, %v2732_v43 }
  0xd0   : > { %v467_v38 = vpop.f32.mrf.mxu2  ;;  %v569_v16 = vpop.f32.mrf.mxu3 }
  0xd1   : > { %v479_v39 = vadd.f32 %v467_v38, %v377_v37  ;;  %v265_v17 = vpop.f32.mrf.mxu0  ;;  %v368_v0 = vpop.f32.mrf.mxu1 }
  0xd2   : > { %v378_v41 = vadd.f32 %v368_v0, %v265_v17 }
  0xd3   : > { %v2976_v31 = vadd.f32 %v569_v16, %v479_v39 }
  0xd4   : > { %2190 = vmatmul.msk.f32.gmra.mxu0 %vm198_vm1, %v2180_v18  ;;  %2208 = vmatmul.msk.f32.gmra.mxu1 %vm198_vm1, %v2198_v40 }
  0xd5   : > { %2226 = vmatmul.msk.f32.gmra.mxu2 %vm198_vm1, %v2216_v19  ;;  %2244 = vmatmul.msk.f32.gmra.mxu3 %vm198_vm1, %v2234_v20 }
  0xd8   : > { %v470_v42 = vpop.f32.mrf.mxu2  ;;  %v572_v21 = vpop.f32.mrf.mxu3 }
  0xd9   : > { %v480_v43 = vadd.f32 %v470_v42, %v378_v41  ;;  %v654_v22 = vpop.f32.mrf.mxu0  ;;  %v757_v12 = vpop.f32.mrf.mxu1  ;;  %v2252_v42 = vld [vmem:[%s2576_s25 + $0x1a0] sm:$0xff] }
  0xda   : > { %v678_v1 = vadd.f32 %v654_v22, %v2914_v3 }
  0xdb   : > { %v2984_v23 = vadd.f32 %v572_v21, %v480_v43  ;;  %v2288_v43 = vld [vmem:[%s2576_s25 + $0x1a1] sm:$0xff] }
  0xdc   : > { %v781_v24 = vadd.f32 %v757_v12, %v678_v1  ;;  %2255 = vmatmul.msk.f32.vlgmr.msrb.gmra.mxu0 %vm198_vm1, %v2751_v48  ;;  %2273 = vmatmul.msk.f32.vlgmr.msrb.gmra.mxu1 %vm198_vm1, %v2757_v50  ;;  %v2270_v1 = vld [vmem:[%s2576_s25 + $0x230] sm:$0xff] }
  0xdd   : > { %2291 = vmatmul.msk.f32.vlgmr.msrb.gmra.mxu2 %vm198_vm1, %v2754_v49  ;;  %2309 = vmatmul.msk.f32.vlgmr.msrb.gmra.mxu3 %vm198_vm1, %v2760_v51  ;;  %v2306_v12 = vld [vmem:[%s2576_s25 + $0x231] sm:$0xff]  ;;  %s2044_s25 = sshll.u32 %s161_s24, 6 }
  0xde   : > { %s163_s12 = scalar_lea.vmem [#allocation3], %s2044_s25 }
  0xdf   : > { %s1948_s30 = sshll.u32 %s163_s12, 4  ;;  %s1949_s30 = int_to_ptr.vmem [resolvable:$true] %s1948_s30 }
  0xe0   : > { %v859_v25 = vpop.f32.mrf.mxu2  ;;  %v961_v27 = vpop.f32.mrf.mxu3 }
  0xe1   : > { %v883_v26 = vadd.f32 %v859_v25, %v781_v24  ;;  %v657_v13 = vpop.f32.mrf.mxu0  ;;  %v760_v32 = vpop.f32.mrf.mxu1 }
  0xe2   : > { %v679_v3 = vadd.f32 %v657_v13, %v2924_v45 }
  0xe3   : > { %v2996_v15 = vadd.f32 %v961_v27, %v883_v26 }
  0xe4   : > { %v782_v33 = vadd.f32 %v760_v32, %v679_v3  ;;  %2256 = vmatmul.msk.f32.gmra.mxu0 %vm198_vm1, %v2771_v52  ;;  %2274 = vmatmul.msk.f32.gmra.mxu1 %vm198_vm1, %v2777_v54 }
  0xe5   : > { %2292 = vmatmul.msk.f32.gmra.mxu2 %vm198_vm1, %v2774_v53  ;;  %2310 = vmatmul.msk.f32.gmra.mxu3 %vm198_vm1, %v2780_v55 }
  0xe8   : > { %v862_v48 = vpop.f32.mrf.mxu2  ;;  %v964_v50 = vpop.f32.mrf.mxu3 }
  0xe9   : > { %v884_v49 = vadd.f32 %v862_v48, %v782_v33  ;;  %v660_v51 = vpop.f32.mrf.mxu0  ;;  %v763_v35 = vpop.f32.mrf.mxu1 }
  0xea   : > { %v680_v45 = vadd.f32 %v660_v51, %v2934_v47 }
  0xeb   : > { %v3007_v34 = vadd.f32 %v964_v50, %v884_v49 }
  0xec   : > { %v783_v44 = vadd.f32 %v763_v35, %v680_v45  ;;  %2257 = vmatmul.msk.f32.gmra.mxu0 %vm198_vm1, %v2791_v56  ;;  %2275 = vmatmul.msk.f32.gmra.mxu1 %vm198_vm1, %v2797_v58 }
  0xed   : > { %2293 = vmatmul.msk.f32.gmra.mxu2 %vm198_vm1, %v2794_v57  ;;  %2311 = vmatmul.msk.f32.gmra.mxu3 %vm198_vm1, %v2800_v59 }
  0xf0   : > { %v865_v52 = vpop.f32.mrf.mxu2  ;;  %v967_v54 = vpop.f32.mrf.mxu3 }
  0xf1   : > { %v885_v53 = vadd.f32 %v865_v52, %v783_v44  ;;  %v663_v55 = vpop.f32.mrf.mxu0  ;;  %v766_v37 = vpop.f32.mrf.mxu1 }
  0xf2   : > { %v681_v47 = vadd.f32 %v663_v55, %v2944_v2 }
  0xf3   : > { %v3018_v36 = vadd.f32 %v967_v54, %v885_v53 }
  0xf4   : > { %v784_v38 = vadd.f32 %v766_v37, %v681_v47  ;;  %2258 = vmatmul.msk.f32.gmra.mxu0 %vm198_vm1, %v2811_v60  ;;  %2276 = vmatmul.msk.f32.gmra.mxu1 %vm198_vm1, %v2817_v62 }
  0xf5   : > { %2294 = vmatmul.msk.f32.gmra.mxu2 %vm198_vm1, %v2814_v61  ;;  %2312 = vmatmul.msk.f32.gmra.mxu3 %vm198_vm1, %v2820_v63 }
  0xf8   : > { %v868_v56 = vpop.f32.mrf.mxu2  ;;  %v970_v58 = vpop.f32.mrf.mxu3 }
  0xf9   : > { %v886_v57 = vadd.f32 %v868_v56, %v784_v38  ;;  %v666_v59 = vpop.f32.mrf.mxu0  ;;  %v769_v16 = vpop.f32.mrf.mxu1 }
  0xfa   : > { %v682_v2 = vadd.f32 %v666_v59, %v2954_v14 }
  0xfb   : > { %v3029_v39 = vadd.f32 %v970_v58, %v886_v57 }
  0xfc   : > { %v785_v17 = vadd.f32 %v769_v16, %v682_v2  ;;  %2259 = vmatmul.msk.f32.gmra.mxu0 %vm198_vm1, %v2846_v4  ;;  %2277 = vmatmul.msk.f32.gmra.mxu1 %vm198_vm1, %v2853_v6 }
  0xfd   : > { %2295 = vmatmul.msk.f32.gmra.mxu2 %vm198_vm1, %v2849_v5  ;;  %2313 = vmatmul.msk.f32.gmra.mxu3 %vm198_vm1, %v2856_v7 }
 0x100   : > { %v871_v60 = vpop.f32.mrf.mxu2  ;;  %v973_v62 = vpop.f32.mrf.mxu3 }
 0x101   : > { %v887_v61 = vadd.f32 %v871_v60, %v785_v17  ;;  %v669_v63 = vpop.f32.mrf.mxu0  ;;  %v772_v19 = vpop.f32.mrf.mxu1 }
 0x102   : > { %v683_v14 = vadd.f32 %v669_v63, %v2964_v46 }
 0x103   : > { %v3040_v18 = vadd.f32 %v973_v62, %v887_v61 }
 0x104   : > { %v786_v0 = vadd.f32 %v772_v19, %v683_v14  ;;  %2260 = vmatmul.msk.f32.gmra.mxu0 %vm198_vm1, %v2867_v8  ;;  %2278 = vmatmul.msk.f32.gmra.mxu1 %vm198_vm1, %v2873_v10  ;;  %v3187_v10 = vld [vmem:[#allocation6_spill] sm:$0xff] }
 0x105   : > { %2296 = vmatmul.msk.f32.gmra.mxu2 %vm198_vm1, %v2870_v9  ;;  %2314 = vmatmul.msk.f32.gmra.mxu3 %vm198_vm1, %v2876_v11 }
 0x108   : > { %v874_v4 = vpop.f32.mrf.mxu2  ;;  %v976_v6 = vpop.f32.mrf.mxu3 }
 0x109   : > { %v888_v5 = vadd.f32 %v874_v4, %v786_v0  ;;  %v672_v7 = vpop.f32.mrf.mxu0  ;;  %v775_v8 = vpop.f32.mrf.mxu1 }
 0x10a   : > { %v684_v46 = vadd.f32 %v672_v7, %v2976_v31 }
 0x10b   : > { %v3051_v40 = vadd.f32 %v976_v6, %v888_v5 }
 0x10c   : > { %v787_v9 = vadd.f32 %v775_v8, %v684_v46  ;;  %2261 = vmatmul.msk.f32.gmra.mxu0 %vm198_vm1, %v2887_v28  ;;  %2279 = vmatmul.msk.f32.gmra.mxu1 %vm198_vm1, %v2893_v30 }
 0x10d   : > { %2297 = vmatmul.msk.f32.gmra.mxu2 %vm198_vm1, %v2890_v29  ;;  %2315 = vmatmul.msk.f32.gmra.mxu3 %vm198_vm1, %v3187_v10 }
 0x110   : > { %v877_v11 = vpop.f32.mrf.mxu2  ;;  %v979_v20 = vpop.f32.mrf.mxu3 }
 0x111   : > { %v889_v31 = vadd.f32 %v877_v11, %v787_v9  ;;  %v675_v41 = vpop.f32.mrf.mxu0  ;;  %v778_v28 = vpop.f32.mrf.mxu1 }
 0x112   : > { %v685_v21 = vadd.f32 %v675_v41, %v2984_v23 }
 0x113   : > { %v3064_v22 = vadd.f32 %v979_v20, %v889_v31 }
 0x114   : > { %v788_v29 = vadd.f32 %v778_v28, %v685_v21  ;;  %2262 = vmatmul.msk.f32.gmra.mxu0 %vm198_vm1, %v2252_v42  ;;  %2280 = vmatmul.msk.f32.gmra.mxu1 %vm198_vm1, %v2270_v1 }
 0x115   : > { %2298 = vmatmul.msk.f32.gmra.mxu2 %vm198_vm1, %v2288_v43  ;;  %2316 = vmatmul.msk.f32.gmra.mxu3 %vm198_vm1, %v2306_v12 }
 0x118   : > { %v880_v30 = vpop.f32.mrf.mxu2  ;;  %v982_v25 = vpop.f32.mrf.mxu3 }
 0x119   : > { %v890_v24 = vadd.f32 %v880_v30, %v788_v29  ;;  %v1064_v26 = vpop.f32.mrf.mxu0  ;;  %v1167_v13 = vpop.f32.mrf.mxu1 }
 0x11a   : > { %v1088_v23 = vadd.f32 %v1064_v26, %v2996_v15 }
 0x11b   : > { %v3072_v27 = vadd.f32 %v982_v25, %v890_v24 }
 0x11c   : > { %v1191_v3 = vadd.f32 %v1167_v13, %v1088_v23 }
 0x120   : > { %v1269_v32 = vpop.f32.mrf.mxu2  ;;  %v1371_v48 = vpop.f32.mrf.mxu3 }
 0x121   : > { %v1293_v33 = vadd.f32 %v1269_v32, %v1191_v3  ;;  %v1067_v49 = vpop.f32.mrf.mxu0  ;;  %v1170_v45 = vpop.f32.mrf.mxu1 }
 0x122   : > { %v1089_v50 = vadd.f32 %v1067_v49, %v3007_v34 }
 0x123   : > { %v1395_v51 = vadd.f32 %v1371_v48, %v1293_v33 }
 0x124   : > { %v1192_v35 = vadd.f32 %v1170_v45, %v1089_v50 }
 0x128   : > { %v1272_v44 = vpop.f32.mrf.mxu2  ;;  %v1374_v53 = vpop.f32.mrf.mxu3 }
 0x129   : > { %v1294_v52 = vadd.f32 %v1272_v44, %v1192_v35  ;;  %v1070_v54 = vpop.f32.mrf.mxu0  ;;  %v1173_v37 = vpop.f32.mrf.mxu1 }
 0x12a   : > { %v1090_v55 = vadd.f32 %v1070_v54, %v3018_v36 }
 0x12b   : > { %v1396_v47 = vadd.f32 %v1374_v53, %v1294_v52 }
 0x12c   : > { %v1193_v15 = vadd.f32 %v1173_v37, %v1090_v55 }
 0x130   : > { %v1275_v38 = vpop.f32.mrf.mxu2  ;;  %v1377_v57 = vpop.f32.mrf.mxu3 }
 0x131   : > { %v1295_v56 = vadd.f32 %v1275_v38, %v1193_v15  ;;  %v1073_v58 = vpop.f32.mrf.mxu0  ;;  %v1176_v34 = vpop.f32.mrf.mxu1 }
 0x132   : > { %v1091_v59 = vadd.f32 %v1073_v58, %v3029_v39 }
 0x133   : > { %v1397_v2 = vadd.f32 %v1377_v57, %v1295_v56 }
 0x134   : > { %v1194_v16 = vadd.f32 %v1176_v34, %v1091_v59 }
 0x138   : > { %v1278_v17 = vpop.f32.mrf.mxu2  ;;  %v1380_v61 = vpop.f32.mrf.mxu3 }
 0x139   : > { %v1296_v60 = vadd.f32 %v1278_v17, %v1194_v16  ;;  %v1076_v62 = vpop.f32.mrf.mxu0  ;;  %v1179_v36 = vpop.f32.mrf.mxu1 }
 0x13a   : > { %v1092_v63 = vadd.f32 %v1076_v62, %v3040_v18 }
 0x13b   : > { %v1398_v14 = vadd.f32 %v1380_v61, %v1296_v60 }
 0x13c   : > { %v1195_v19 = vadd.f32 %v1179_v36, %v1092_v63 }
 0x140   : > { %v1281_v0 = vpop.f32.mrf.mxu2  ;;  %v1383_v5 = vpop.f32.mrf.mxu3 }
 0x141   : > { %v1297_v4 = vadd.f32 %v1281_v0, %v1195_v19  ;;  %v1079_v6 = vpop.f32.mrf.mxu0  ;;  %v1182_v39 = vpop.f32.mrf.mxu1 }
 0x142   : > { %v1093_v7 = vadd.f32 %v1079_v6, %v3051_v40 }
 0x143   : > { %v1399_v46 = vadd.f32 %v1383_v5, %v1297_v4 }
 0x144   : > { %v1196_v8 = vadd.f32 %v1182_v39, %v1093_v7 }
 0x148   : > { %v1284_v9 = vpop.f32.mrf.mxu2  ;;  %v1386_v11 = vpop.f32.mrf.mxu3 }
 0x149   : > { %v1298_v10 = vadd.f32 %v1284_v9, %v1196_v8  ;;  %v1082_v31 = vpop.f32.mrf.mxu0  ;;  %v1185_v41 = vpop.f32.mrf.mxu1 }
 0x14a   : > { %v1094_v5 = vadd.f32 %v1082_v31, %v3064_v22 }
 0x14b   : > { %v1400_v20 = vadd.f32 %v1386_v11, %v1298_v10 }
 0x14c   : > { %v1197_v11 = vadd.f32 %v1185_v41, %v1094_v5 }
 0x150   : > { %v1287_v42 = vpop.f32.mrf.mxu2  ;;  %v3080_v18 = vpop.f32.mrf.mxu3 }
 0x151   : > { %v1085_v43 = vpop.f32.mrf.mxu0  ;;  %v3082_v21 = vpop.f32.mrf.mxu1 }
 0x158   : > { %v3084_v28 = vpop.f32.mrf.mxu2  ;;  %v3086_v1 = vpop.f32.mrf.mxu3 }
 0x159   : > { %v1474_v40 = vpop.f32.mrf.mxu0  ;;  %v1577_v12 = vpop.f32.mrf.mxu1 }
 0x15a   : > { %v1498_v29 = vadd.f32 %v1474_v40, %v1395_v51 }
 0x15c   : > { %v1601_v26 = vadd.f32 %v1577_v12, %v1498_v29  ;;  %v1299_v29 = vadd.f32 %v1287_v42, %v1197_v11 }
 0x160   : > { %v1679_v30 = vpop.f32.mrf.mxu2  ;;  %v1781_v24 = vpop.f32.mrf.mxu3 }
 0x161   : > { %v1477_v25 = vpop.f32.mrf.mxu0  ;;  %v1580_v13 = vpop.f32.mrf.mxu1  ;;  %v1703_v3 = vadd.f32 %v1679_v30, %v1601_v26 }
 0x162   : > { %v1499_v23 = vadd.f32 %v1477_v25, %v1396_v47  ;;  %v1095_v25 = vadd.f32 %v1085_v43, %v3072_v27 }
 0x163   : > { %v3088_v48 = vadd.f32 %v1781_v24, %v1703_v3 }
 0x164   : > { %v1602_v32 = vadd.f32 %v1580_v13, %v1499_v23  ;;  %v1401_v23 = vadd.f32 %v3080_v18, %v1299_v29 }
 0x165   : > { %v1850_v51 = vmul.f32 %v3088_v48, %v3088_v48 }
 0x168   : > { %v1682_v33 = vpop.f32.mrf.mxu2  ;;  %v1784_v50 = vpop.f32.mrf.mxu3 }
 0x169   : > { %v1704_v49 = vadd.f32 %v1682_v33, %v1602_v32  ;;  %v1480_v45 = vpop.f32.mrf.mxu0  ;;  %v1583_v52 = vpop.f32.mrf.mxu1 }
 0x16a   : > { %v1500_v35 = vadd.f32 %v1480_v45, %v1397_v2 }
 0x16b   : > { %v3090_v44 = vadd.f32 %v1784_v50, %v1704_v49 }
 0x16c   : > { %v1603_v47 = vadd.f32 %v1583_v52, %v1500_v35  ;;  %v2466_v35 = vmov 64.0  }
 0x16d   : > { %v1829_v53 = vadd.f32 %v3090_v44, %v3088_v48  ;;  %v1851_v54 = vmul.f32 %v3090_v44, %v3090_v44  ;;  %2382 = vrcp.f32 %v2466_v35 }
 0x16f   : > { %v1858_v55 = vadd.f32 %v1851_v54, %v1850_v51 }
 0x170   : > { %v1685_v37 = vpop.f32.mrf.mxu2  ;;  %v1787_v38 = vpop.f32.mrf.mxu3 }
 0x171   : > { %v1705_v15 = vadd.f32 %v1685_v37, %v1603_v47  ;;  %v1483_v56 = vpop.f32.mrf.mxu0  ;;  %v1586_v59 = vpop.f32.mrf.mxu1 }
 0x172   : > { %v1501_v57 = vadd.f32 %v1483_v56, %v1398_v14 }
 0x173   : > { %v3098_v58 = vadd.f32 %v1787_v38, %v1705_v15 }
 0x174   : > { %v1604_v17 = vadd.f32 %v1586_v59, %v1501_v57 }
 0x175   : > { %v1830_v2 = vadd.f32 %v1829_v53, %v3098_v58  ;;  %v1852_v34 = vmul.f32 %v3098_v58, %v3098_v58 }
 0x177   : > { %v1859_v16 = vadd.f32 %v1858_v55, %v1852_v34 }
 0x178   : > { %v1688_v60 = vpop.f32.mrf.mxu2  ;;  %v1790_v62 = vpop.f32.mrf.mxu3 }
 0x179   : > { %v1706_v61 = vadd.f32 %v1688_v60, %v1604_v17  ;;  %v1486_v63 = vpop.f32.mrf.mxu0  ;;  %v1589_v0 = vpop.f32.mrf.mxu1 }
 0x17a   : > { %v1502_v36 = vadd.f32 %v1486_v63, %v1399_v46 }
 0x17b   : > { %v3103_v19 = vadd.f32 %v1790_v62, %v1706_v61 }
 0x17c   : > { %v1605_v7 = vadd.f32 %v1589_v0, %v1502_v36 }
 0x17d   : > { %v1831_v14 = vadd.f32 %v1830_v2, %v3103_v19  ;;  %v1853_v4 = vmul.f32 %v3103_v19, %v3103_v19 }
 0x17f   : > { %v1860_v6 = vadd.f32 %v1859_v16, %v1853_v4 }
 0x180   : > { %v1691_v39 = vpop.f32.mrf.mxu2  ;;  %v1793_v9 = vpop.f32.mrf.mxu3 }
 0x181   : > { %v1707_v8 = vadd.f32 %v1691_v39, %v1605_v7  ;;  %v1489_v10 = vpop.f32.mrf.mxu0  ;;  %v1592_v46 = vpop.f32.mrf.mxu1 }
 0x182   : > { %v1503_v40 = vadd.f32 %v1489_v10, %v1400_v20  ;;  %v1198_v20 = vadd.f32 %v3082_v21, %v1095_v25 }
 0x183   : > { %v3109_v12 = vadd.f32 %v1793_v9, %v1707_v8 }
 0x184   : > { %v1606_v31 = vadd.f32 %v1592_v46, %v1503_v40  ;;  %v1300_v49 = vadd.f32 %v3084_v28, %v1198_v20  ;;  %v2383_v28 = vpop.eup %2382 }
 0x185   : > { %v1832_v30 = vadd.f32 %v1831_v14, %v3109_v12  ;;  %v1854_v24 = vmul.f32 %v3109_v12, %v3109_v12  ;;  %v1843_v59 = vmul.f32 64.0, %v2383_v28  ;;  %vm1847_vm2 = vweird.f32 %v2383_v28 }
 0x186   : > { %v1402_v52 = vadd.f32 %v3086_v1, %v1300_v49 }
 0x187   : > { %v1861_v22 = vadd.f32 %v1860_v6, %v1854_v24  ;;  %v1844_v16 = vsub.f32 1.0, %v1843_v59 }
 0x188   : > { %v1694_v26 = vpop.f32.mrf.mxu2  ;;  %v1796_v3 = vpop.f32.mrf.mxu3 }
 0x189   : > { %v1708_v13 = vadd.f32 %v1694_v26, %v1606_v31  ;;  %v1492_v41 = vpop.f32.mrf.mxu0  ;;  %v1595_v42 = vpop.f32.mrf.mxu1  ;;  %v1845_v63 = vmul.f32 %v2383_v28, %v1844_v16 }
 0x18a   : > { %v1504_v32 = vadd.f32 %v1492_v41, %v1401_v23 }
 0x18b   : > { %v3117_v33 = vadd.f32 %v1796_v3, %v1708_v13  ;;  %v1846_v5 = vadd.f32 %v2383_v28, %v1845_v63 }
 0x18c   : > { %v1607_v45 = vadd.f32 %v1595_v42, %v1504_v32 }
 0x18d   : > { %v1833_v50 = vadd.f32 %v1832_v30, %v3117_v33  ;;  %v1855_v27 = vmul.f32 %v3117_v33, %v3117_v33  ;;  %v1848_v9 = vsel %vm1847_vm2, %v2383_v28, %v1846_v5 }
 0x18f   : > { %v1862_v43 = vadd.f32 %v1861_v22, %v1855_v27 }
 0x190   : > { %v1697_v18 = vpop.f32.mrf.mxu2  ;;  %v1799_v21 = vpop.f32.mrf.mxu3 }
 0x191   : > { %v1709_v51 = vadd.f32 %v1697_v18, %v1607_v45  ;;  %v1495_v53 = vpop.f32.mrf.mxu0  ;;  %v1598_v47 = vpop.f32.mrf.mxu1 }
 0x192   : > { %v1505_v54 = vadd.f32 %v1495_v53, %v1402_v52 }
 0x193   : > { %v3124_v55 = vadd.f32 %v1799_v21, %v1709_v51 }
 0x194   : > { %v1608_v56 = vadd.f32 %v1598_v47, %v1505_v54 }
 0x195   : > { %v1834_v37 = vadd.f32 %v1833_v50, %v3124_v55  ;;  %v1856_v15 = vmul.f32 %v3124_v55, %v3124_v55 }
 0x197   : > { %v1863_v38 = vadd.f32 %v1862_v43, %v1856_v15 }
 0x198   : > { %v1700_v57 = vpop.f32.mrf.mxu2  ;;  %v1802_v34 = vpop.f32.mrf.mxu3 }
 0x199   : > { %v1710_v2 = vadd.f32 %v1700_v57, %v1608_v56 }
 0x19b   : > { %v1812_v1 = vadd.f32 %v1802_v34, %v1710_v2 }
 0x19d   : > { %v1835_v17 = vadd.f32 %v1834_v37, %v1812_v1  ;;  %v1857_v60 = vmul.f32 %v1812_v1, %v1812_v1 }
 0x19f   : > { %v1836_v61 = vrot.slane %v1835_v17, 4  ;;  %v1864_v62 = vadd.f32 %v1863_v38, %v1857_v60 }
 0x1a1   : > { %v1837_v36 = vadd.f32 %v1836_v61, %v1835_v17  ;;  %v1865_v0 = vrot.slane %v1864_v62, 4 }
 0x1a3   : > { %v1838_v14 = vrot.slane %v1837_v36, 2  ;;  %v1866_v4 = vadd.f32 %v1865_v0, %v1864_v62 }
 0x1a5   : > { %v1839_v6 = vadd.f32 %v1838_v14, %v1837_v36  ;;  %v1867_v7 = vrot.slane %v1866_v4, 2 }
 0x1a7   : > { %v1840_v39 = vrot.slane %v1839_v6, 1  ;;  %v1868_v8 = vadd.f32 %v1867_v7, %v1866_v4 }
 0x1a9   : > { %v1841_v10 = vadd.f32 %v1840_v39, %v1839_v6  ;;  %v1869_v11 = vrot.slane %v1868_v8, 1 }
 0x1ab   : > { %v1849_v40 = vmul.f32 %v1848_v9, %v1841_v10  ;;  %v1870_v46 = vadd.f32 %v1869_v11, %v1868_v8 }
 0x1ad   : > { %v1871_v29 = vmul.f32 %v1870_v46, %v1848_v9  ;;  %v1872_v30 = vmul.f32 %v1849_v40, %v1849_v40  ;;  %v1886_v24 = vsub.f32 %v3088_v48, %v1849_v40  ;;  %v1887_v25 = vsub.f32 %v3090_v44, %v1849_v40 }
 0x1ae   : > { %v1888_v22 = vsub.f32 %v3098_v58, %v1849_v40  ;;  %v1889_v31 = vsub.f32 %v3103_v19, %v1849_v40  ;;  %v1890_v26 = vsub.f32 %v3109_v12, %v1849_v40  ;;  %v1891_v23 = vsub.f32 %v3117_v33, %v1849_v40 }
 0x1af   : > { %v1873_v13 = vsub.f32 %v1871_v29, %v1872_v30  ;;  %v1892_v3 = vsub.f32 %v3124_v55, %v1849_v40  ;;  %v1893_v41 = vsub.f32 %v1812_v1, %v1849_v40 }
 0x1b1   : > { %v1874_v20 = vmax.f32 %v1873_v13, 0.0 }
 0x1b3   : > { %v1875_v32 = vadd.f32 1e-05, %v1874_v20 }
 0x1b5   : > { %2384 = vrsqrt.f32 %v1875_v32  ;;  %vm1882_vm4 = vweird.f32 %v1875_v32 }
 0x1bb   : > { %v2385_v48 = vpop.eup %2384 }
 0x1bc   : > { %v1877_v42 = vmul.f32 %v2385_v48, %v1875_v32  ;;  %vm1883_vm3 = vweird.f32 %v2385_v48 }
 0x1bd   : > { %vm1884_vm5 = vmor %vm1882_vm4, %vm1883_vm3 }
 0x1be   : > { %v1878_v44 = vmul.f32 %v2385_v48, %v1877_v42 }
 0x1c0   : > { %v1879_v49 = vmul.f32 0.5, %v1878_v44 }
 0x1c2   : > { %v1880_v58 = vsub.f32 1.5, %v1879_v49 }
 0x1c4   : > { %v1881_v19 = vmul.f32 %v2385_v48, %v1880_v58 }
 0x1c6   : > { %v1885_v12 = vsel %vm1884_vm5, %v2385_v48, %v1881_v19 }
 0x1c7   : > { %v1894_v33 = vmul.f32 %v1886_v24, %v1885_v12  ;;  %v1895_v50 = vmul.f32 %v1887_v25, %v1885_v12  ;;  %v1896_v27 = vmul.f32 %v1888_v22, %v1885_v12  ;;  %v1897_v43 = vmul.f32 %v1889_v31, %v1885_v12 }
 0x1c8   : > { %v1898_v45 = vmul.f32 %v1890_v26, %v1885_v12  ;;  %v1899_v35 = vmul.f32 %v1891_v23, %v1885_v12  ;;  %v1900_v18 = vmul.f32 %v1892_v3, %v1885_v12  ;;  %v1901_v52 = vmul.f32 %v1893_v41, %v1885_v12 }
 0x1c9   : > { %vm1902_vm6 = vcmp.ge.f32.partialorder %v1894_v33, 0.0  ;;  %vm1903_vm7 = vcmp.ge.f32.partialorder %v1895_v50, 0.0  ;;  %vm1904_vm8 = vcmp.ge.f32.partialorder %v1896_v27, 0.0  ;;  %vm1905_vm9 = vcmp.ge.f32.partialorder %v1897_v43, 0.0 }
 0x1ca   : > { %v1910_v51 = vmul.f32 0.2, %v1894_v33  ;;  %v1911_v21 = vmul.f32 0.2, %v1895_v50  ;;  %v1912_v53 = vmul.f32 0.2, %v1896_v27 }
 0x1cb   : > { %vm1906_vm10 = vcmp.ge.f32.partialorder %v1898_v45, 0.0  ;;  %vm1909_vm11 = vcmp.ge.f32.partialorder %v1901_v52, 0.0  ;;  %v1913_v54 = vmul.f32 0.2, %v1897_v43  ;;  %v1914_v55 = vmul.f32 0.2, %v1898_v45 }
 0x1cc   : > { %v1915_v47 = vmul.f32 0.2, %v1899_v35  ;;  %v1917_v28 = vmul.f32 0.2, %v1901_v52  ;;  %v1918_v37 = vsel %vm1902_vm6, %v1894_v33, %v1910_v51  ;;  %v1919_v15 = vsel %vm1903_vm7, %v1895_v50, %v1911_v21 }
 0x1cd   : > { %vm1907_vm12 = vcmp.ge.f32.partialorder %v1899_v35, 0.0  ;;  %v1916_v38 = vmul.f32 0.2, %v1900_v18  ;;  %v1920_v56 = vsel %vm1904_vm8, %v1896_v27, %v1912_v53  ;;  %1926 = vst [vmem:[%s163_s12] sm:$0xff] %v1918_v37  ;;  %vm1908_vm13 = vcmp.ge.f32.partialorder %v1900_v18, 0.0 }
 0x1ce   : > { %v1925_v57 = vsel %vm1909_vm11, %v1901_v52, %v1917_v28  ;;  %v1921_v59 = vsel %vm1905_vm9, %v1897_v43, %v1913_v54  ;;  %1927 = vst [vmem:[%s163_s12 + $0x8] sm:$0xff] %v1919_v15  ;;  %v1922_v2 = vsel %vm1906_vm10, %v1898_v45, %v1914_v55  ;;  %v1923_v34 = vsel %vm1907_vm12, %v1899_v35, %v1915_v47 }
 0x1cf   : > { %1933 = vst [vmem:[%s163_s12 + $0x38] sm:$0xff] %v1925_v57  ;;  %v1924_v1 = vsel %vm1908_vm13, %v1900_v18, %v1916_v38 }
 0x1d0   : > { %1928 = vst [vmem:[%s163_s12 + $0x10] sm:$0xff] %v1920_v56 }
 0x1d1   : > { %1929 = vst [vmem:[%s163_s12 + $0x18] sm:$0xff] %v1921_v59 }
 0x1d2   : > { %1930 = vst [vmem:[%s163_s12 + $0x20] sm:$0xff] %v1922_v2 }
 0x1d3   : > { %1931 = vst [vmem:[%s163_s12 + $0x28] sm:$0xff] %v1923_v34 }
 0x1d4   : > { %1932 = vst [vmem:[%s163_s12 + $0x30] sm:$0xff] %v1924_v1 }
 0x1d5   : > { %2413 = shalt.err (!%p2410_p5)
}
 0x1d6   : > { %s2467_s20 = smov 128   ;;  %s2468_s23 = smov 8  }
 0x1d7   : > { %2324 = dma.vmem_to_hbm [thread:$0]  (%p2524_p4), %s1949_s30, 1024, %s1951_s3, %s1935_s4, %s2467_s20, %s2467_s20, %s2468_s23  }
 0x1d8 PF: > { %p2330_p6 = scmp.ge.s32.totalorder %s2464_s14, 2  ;;  %s1965_s24 = sand.u32 1, %s2444_s9  }
 0x1d9   : > { %s1966_s25 = scalar_lea.sflag [#allocation4], %s1965_s24 }
 0x1da   : > { %p2327_p7 = pnand %p2330_p6, %p2531_p8 }
 0x1dc   : > { %p2328_p9 = pneg %p2327_p7 }
 0x1de   : > { %2439 = dma.done.wait (%p2328_p9), %s1966_s25, 1024  }
 0x1df   : > { %2441 = vsyncadd (%p2328_p9), %s1966_s25, 4294966272  ;;  %s15_s14 = sadd.s32 1, %s2464_s14   ;;  %s3188_s9 = smov %s2448_s10 }
 0x1e0   : > { %p12_p10 = scmp.ge.s32.totalorder %s15_s14, 4   ;;  %s3189_s10 = smov %s2452_s11 }
 0x1e1   : > { %s3190_s11 = smov %s2537_s22  ;;  %s3191_s12 = smov %s2460_s13 }
 0x1e2   : > { %s3192_s13 = smov %s3194_s17  ;;  %14 = sbr.rel (!%p12_p10) target bundleno = 4 (0x4), region = 88 }
 0x1e7   :  { %1972 = vsyncpa [#allocation4], 1 }
 0x1e8   :  { %1974 = vsyncpa [#allocation4 + $0x1], 1 }

</bundles_post_ra>
